<compile_context>
chip_gen: v7x
topology: tpu7x:2x2x1
jax: 0.10.0
libtpu: 0.0.40
codegen_flags: <defaults>
</compile_context>

<pallas_src>
import jax
import jax.numpy as jnp
from jax.experimental import pallas as pl
from jax.experimental.pallas import tpu as pltpu

_BN_EPS = 1e-5


# --------------------------------------------------------------------------- in-kernel math helpers
def _erf(x):
  # Abramowitz & Stegun 7.1.26 rational approximation, |error| < 1.5e-7.
  # Built only from exp / mul / add / where so it lowers cleanly (exp lands on the EUP slot).
  a1, a2, a3, a4, a5 = 0.254829592, -0.284496736, 1.421413741, -1.453152027, 1.061405429
  p = 0.3275911
  s = jnp.where(x >= 0.0, 1.0, -1.0)
  ax = jnp.abs(x)
  t = 1.0 / (1.0 + p * ax)
  poly = ((((a5 * t + a4) * t + a3) * t + a2) * t + a1) * t
  return s * (1.0 - poly * jnp.exp(-ax * ax))


def _gelu(x):
  # exact (erf-based) GELU, matching torch.nn.GELU() default
  return 0.5 * x * (1.0 + _erf(x * 0.7071067811865475))


# ----------------------------------------------------------------------------- fused forward kernel
def _mlp_fused_kernel(x_ref, bn_ref, w1_ref, b1_ref, w2_ref, b2_ref,
                      w3_ref, b3_ref, wc_ref, bc_ref, o_ref):
  """One batch item per grid step: 3x (Linear+BN+GELU) -> mean over n_input -> classifier."""

  def stage(h, w_ref, b_ref, col):
    y = jnp.dot(h, w_ref[...], preferred_element_type=jnp.float32) + b_ref[...]
    # folded BatchNorm1d (eval): per-row (= per n_input channel) scale & shift
    y = y * bn_ref[:, col:col + 1] + bn_ref[:, col + 1:col + 2]
    return _gelu(y)

  h = x_ref[...]                                       # (N, D) rows of this batch item
  h = stage(h, w1_ref, b1_ref, 0)                      # (N, D/2)
  h = stage(h, w2_ref, b2_ref, 2)                      # (N, D/4)
  h = stage(h, w3_ref, b3_ref, 4)                      # (N, D/8)
  m = jnp.mean(h, axis=0, keepdims=True)               # torch x.mean(dim=1)  -> (1, D/8)
  o_ref[0] = jnp.dot(m, wc_ref[...], preferred_element_type=jnp.float32) + bc_ref[...]


def mlp_forward(params, x):
  """x: (B, n_input, d_input) float32. Returns (B, num_classes) (squeezed if num_classes == 1)."""
  B, N, D = x.shape
  assert N % 8 == 0 or B == 1, "n_input must be a multiple of 8 for the (N, D) row tiling"

  w1, b1 = params['l1']['w'], params['l1']['b']        # weights already (in, out) — no .T in jit
  w2, b2 = params['l2']['w'], params['l2']['b']
  w3, b3 = params['l3']['w'], params['l3']['b']
  wc, bc = params['cls']['w'], params['cls']['b']
  D1, D2, D3 = w1.shape[1], w2.shape[1], w3.shape[1]
  C = wc.shape[1]

  # Fold BatchNorm1d (eval) into per-channel scale/shift; pack all 3 layers into one (N, 6) table.
  def fold(bn):
    gamma, beta, mean, var = bn
    sc = gamma * jax.lax.rsqrt(var + _BN_EPS)
    return sc, beta - mean * sc

  sc1, sh1 = fold(params['l1']['bn'])
  sc2, sh2 = fold(params['l2']['bn'])
  sc3, sh3 = fold(params['l3']['bn'])
  bn_tab = jnp.stack([sc1, sh1, sc2, sh2, sc3, sh3], axis=1)   # (N, 6)

  x2d = x.reshape(B * N, D)                             # contiguous, free reshape

  out = pl.pallas_call(
      _mlp_fused_kernel,
      out_shape=jax.ShapeDtypeStruct((B, 1, C), jnp.float32),
      grid=(B,),
      in_specs=[
          pl.BlockSpec((N, D), lambda b: (b, 0)),       # rows of batch item b
          pl.BlockSpec((N, 6), lambda b: (0, 0)),       # packed BN scale/shift (VMEM-resident)
          pl.BlockSpec((D, D1), lambda b: (0, 0)),      # layer1 weight (in, out)
          pl.BlockSpec((1, D1), lambda b: (0, 0)),      # layer1 bias
          pl.BlockSpec((D1, D2), lambda b: (0, 0)),     # layer2 weight
          pl.BlockSpec((1, D2), lambda b: (0, 0)),      # layer2 bias
          pl.BlockSpec((D2, D3), lambda b: (0, 0)),     # layer3 weight
          pl.BlockSpec((1, D3), lambda b: (0, 0)),      # layer3 bias
          pl.BlockSpec((D3, C), lambda b: (0, 0)),      # classifier weight
          pl.BlockSpec((1, C), lambda b: (0, 0)),       # classifier bias
      ],
      out_specs=pl.BlockSpec((1, 1, C), lambda b: (b, 0, 0)),
      compiler_params=pltpu.CompilerParams(
          dimension_semantics=("parallel",)),           # batches independent -> megacore on v7x
  )(x2d, bn_tab, w1, b1.reshape(1, D1), w2, b2.reshape(1, D2),
    w3, b3.reshape(1, D3), wc, bc.reshape(1, C))

  logits = out.reshape(B, C)
  if C == 1:                                            # torch .squeeze(-1)
    logits = jnp.squeeze(logits, axis=-1)
  return logits


# -------------------------------------------------------------------------------- pure-JAX reference
def mlp_reference(params, x):
  def bn_eval(h, bn):                                   # h: (B, N, L), channel axis = 1
    gamma, beta, mean, var = bn
    sc = gamma / jnp.sqrt(var + _BN_EPS)
    return h * sc[None, :, None] + (beta - mean * sc)[None, :, None]

  h = x
  for name in ('l1', 'l2', 'l3'):
    w, b = params[name]['w'], params[name]['b']
    h = jnp.einsum('bnd,dk->bnk', h, w, precision=jax.lax.Precision.HIGHEST) + b
    h = jax.nn.gelu(bn_eval(h, params[name]['bn']), approximate=False)
  h = h.mean(axis=1)
  logits = jnp.dot(h, params['cls']['w'], precision=jax.lax.Precision.HIGHEST) + params['cls']['b']
  if logits.shape[-1] == 1:
    logits = jnp.squeeze(logits, axis=-1)
  return logits


# ------------------------------------------------------------------------------------------ params
def init_params(key, d_input, n_input, num_classes):
  D, N = d_input, n_input
  ks = iter(jax.random.split(key, 8))

  def linear_p(k, in_f, out_f):
    k1, k2 = jax.random.split(k)
    bound = 1.0 / (in_f ** 0.5)
    w = jax.random.uniform(k1, (out_f, in_f), jnp.float32, -bound, bound)   # torch layout
    b = jax.random.uniform(k2, (out_f,), jnp.float32, -bound, bound)
    return {'w': w.T, 'b': b}                           # pre-transpose ONCE here, not per forward

  def bn_p(k, c):
    k1, k2, k3, k4 = jax.random.split(k, 4)
    gamma = 1.0 + 0.1 * jax.random.normal(k1, (c,), jnp.float32)
    beta = 0.1 * jax.random.normal(k2, (c,), jnp.float32)
    mean = 0.05 * jax.random.normal(k3, (c,), jnp.float32)
    var = 1.0 + 0.2 * jax.random.uniform(k4, (c,), jnp.float32)
    return gamma, beta, mean, var

  return {
      'l1': {**linear_p(next(ks), D, D // 2), 'bn': bn_p(next(ks), N)},
      'l2': {**linear_p(next(ks), D // 2, D // 4), 'bn': bn_p(next(ks), N)},
      'l3': {**linear_p(next(ks), D // 4, D // 8), 'bn': bn_p(next(ks), N)},
      'cls': linear_p(next(ks), D // 8, num_classes),
  }


# -------------------------------------------------------------------------------------------- main
if __name__ == "__main__":
  # small shapes consistent with the module: hidden chain 256 -> 128 -> 64 -> 32 -> 8 classes
  d_input, n_input, num_classes, batch = 256, 32, 8, 4

  key = jax.random.PRNGKey(0)
  kp, kx = jax.random.split(key)
  params = init_params(kp, d_input, n_input, num_classes)
  x = jax.random.normal(kx, (batch, n_input, d_input), jnp.float32)

  fwd = jax.jit(mlp_forward)
  logits = fwd(params, x)
  jax.block_until_ready(logits)

  assert logits.shape == (batch, num_classes), logits.shape
  assert bool(jnp.all(jnp.isfinite(logits)))

  ref = jax.jit(mlp_reference)(params, x)
  jax.block_until_ready(ref)
  assert bool(jnp.allclose(logits, ref, rtol=1e-2, atol=1e-2)), \
      float(jnp.max(jnp.abs(logits - ref)))

  print("KERNEL_OK")
</pallas_src>

<mosaic_0001>
module attributes {stable_mosaic.version = 11 : i64} {
  func.func @_mlp_fused_kernel(%arg0: i32, %arg1: memref<32x256xf32, #tpu.memory_space<vmem>>, %arg2: memref<32x6xf32, #tpu.memory_space<vmem>>, %arg3: memref<256x128xf32, #tpu.memory_space<vmem>>, %arg4: memref<1x128xf32, #tpu.memory_space<vmem>>, %arg5: memref<128x64xf32, #tpu.memory_space<vmem>>, %arg6: memref<1x64xf32, #tpu.memory_space<vmem>>, %arg7: memref<64x32xf32, #tpu.memory_space<vmem>>, %arg8: memref<1x32xf32, #tpu.memory_space<vmem>>, %arg9: memref<32x8xf32, #tpu.memory_space<vmem>>, %arg10: memref<1x8xf32, #tpu.memory_space<vmem>>, %arg11: memref<1x1x8xf32, #tpu.memory_space<vmem>>) attributes {dimension_semantics = [#tpu.dimension_semantics<parallel>], iteration_bounds = array<i64: 4>, scalar_prefetch = 0 : i64, scratch_operands = 0 : i64, tpu.core_type = #tpu.core_type<tc>, window_params = [{transform_indices = @transform_0, window_bounds = array<i64: 32, 256>}, {pipeline_mode = #tpu.pipeline_mode<synchronous>, transform_indices = @transform_1, window_bounds = array<i64: 32, 6>}, {pipeline_mode = #tpu.pipeline_mode<synchronous>, transform_indices = @transform_2, window_bounds = array<i64: 256, 128>}, {pipeline_mode = #tpu.pipeline_mode<synchronous>, transform_indices = @transform_3, window_bounds = array<i64: 1, 128>}, {pipeline_mode = #tpu.pipeline_mode<synchronous>, transform_indices = @transform_4, window_bounds = array<i64: 128, 64>}, {pipeline_mode = #tpu.pipeline_mode<synchronous>, transform_indices = @transform_5, window_bounds = array<i64: 1, 64>}, {pipeline_mode = #tpu.pipeline_mode<synchronous>, transform_indices = @transform_6, window_bounds = array<i64: 64, 32>}, {pipeline_mode = #tpu.pipeline_mode<synchronous>, transform_indices = @transform_7, window_bounds = array<i64: 1, 32>}, {pipeline_mode = #tpu.pipeline_mode<synchronous>, transform_indices = @transform_8, window_bounds = array<i64: 32, 8>}, {pipeline_mode = #tpu.pipeline_mode<synchronous>, transform_indices = @transform_9, window_bounds = array<i64: 1, 8>}, {transform_indices = @transform_10, window_bounds = array<i64: 1, 1, 8>}]} {
    %c0 = arith.constant 0 : index
    %c0_0 = arith.constant 0 : index
    %0 = vector.load %arg1[%c0, %c0_0] : memref<32x256xf32, #tpu.memory_space<vmem>>, vector<32x256xf32>
    %c0_1 = arith.constant 0 : index
    %c0_2 = arith.constant 0 : index
    %1 = vector.load %arg3[%c0_1, %c0_2] : memref<256x128xf32, #tpu.memory_space<vmem>>, vector<256x128xf32>
    %cst = arith.constant dense<0.000000e+00> : vector<32x128xf32>
    %2 = tpu.matmul %0, %1, %cst {dimension_numbers = #tpu.dot_dimension_numbers<[1], [0], [0], [1], [0, 0, 1, 1], [], []>} : vector<32x256xf32>, vector<256x128xf32>, vector<32x128xf32> -> vector<32x128xf32>
    %c0_3 = arith.constant 0 : index
    %c0_4 = arith.constant 0 : index
    %3 = vector.load %arg4[%c0_3, %c0_4] : memref<1x128xf32, #tpu.memory_space<vmem>>, vector<1x128xf32>
    %4 = vector.broadcast %3 : vector<1x128xf32> to vector<32x128xf32>
    %5 = arith.addf %2, %4 : vector<32x128xf32>
    %c0_5 = arith.constant 0 : index
    %c0_6 = arith.constant 0 : index
    %6 = vector.load %arg2[%c0_5, %c0_6] : memref<32x6xf32, #tpu.memory_space<vmem>>, vector<32x1xf32>
    %7 = vector.broadcast %6 : vector<32x1xf32> to vector<32x128xf32>
    %8 = arith.mulf %5, %7 : vector<32x128xf32>
    %c0_7 = arith.constant 0 : index
    %c1 = arith.constant 1 : index
    %9 = vector.load %arg2[%c0_7, %c1] : memref<32x6xf32, #tpu.memory_space<vmem>>, vector<32x1xf32>
    %10 = vector.broadcast %9 : vector<32x1xf32> to vector<32x128xf32>
    %11 = arith.addf %8, %10 : vector<32x128xf32>
    %cst_8 = arith.constant 5.000000e-01 : f32
    %12 = vector.broadcast %cst_8 : f32 to vector<32x128xf32>
    %13 = arith.mulf %12, %11 : vector<32x128xf32>
    %cst_9 = arith.constant 0.707106769 : f32
    %14 = vector.broadcast %cst_9 : f32 to vector<32x128xf32>
    %15 = arith.mulf %11, %14 : vector<32x128xf32>
    %cst_10 = arith.constant 0.000000e+00 : f32
    %16 = vector.broadcast %cst_10 : f32 to vector<32x128xf32>
    %17 = arith.cmpf oge, %15, %16 : vector<32x128xf32>
    %cst_11 = arith.constant 1.000000e+00 : f32
    %cst_12 = arith.constant -1.000000e+00 : f32
    %18 = vector.broadcast %cst_11 : f32 to vector<32x128xf32>
    %19 = vector.broadcast %cst_12 : f32 to vector<32x128xf32>
    %20 = arith.select %17, %18, %19 : vector<32x128xi1>, vector<32x128xf32>
    %21 = math.absf %15 : vector<32x128xf32>
    %cst_13 = arith.constant 0.327591091 : f32
    %22 = vector.broadcast %cst_13 : f32 to vector<32x128xf32>
    %23 = arith.mulf %22, %21 : vector<32x128xf32>
    %cst_14 = arith.constant 1.000000e+00 : f32
    %24 = vector.broadcast %cst_14 : f32 to vector<32x128xf32>
    %25 = arith.addf %24, %23 : vector<32x128xf32>
    %cst_15 = arith.constant 1.000000e+00 : f32
    %26 = vector.broadcast %cst_15 : f32 to vector<32x128xf32>
    %27 = arith.divf %26, %25 : vector<32x128xf32>
    %cst_16 = arith.constant 1.06140542 : f32
    %28 = vector.broadcast %cst_16 : f32 to vector<32x128xf32>
    %29 = arith.mulf %28, %27 : vector<32x128xf32>
    %cst_17 = arith.constant -1.45315206 : f32
    %30 = vector.broadcast %cst_17 : f32 to vector<32x128xf32>
    %31 = arith.addf %29, %30 : vector<32x128xf32>
    %32 = arith.mulf %31, %27 : vector<32x128xf32>
    %cst_18 = arith.constant 1.42141378 : f32
    %33 = vector.broadcast %cst_18 : f32 to vector<32x128xf32>
    %34 = arith.addf %32, %33 : vector<32x128xf32>
    %35 = arith.mulf %34, %27 : vector<32x128xf32>
    %cst_19 = arith.constant -0.284496725 : f32
    %36 = vector.broadcast %cst_19 : f32 to vector<32x128xf32>
    %37 = arith.addf %35, %36 : vector<32x128xf32>
    %38 = arith.mulf %37, %27 : vector<32x128xf32>
    %cst_20 = arith.constant 0.254829586 : f32
    %39 = vector.broadcast %cst_20 : f32 to vector<32x128xf32>
    %40 = arith.addf %38, %39 : vector<32x128xf32>
    %41 = arith.mulf %40, %27 : vector<32x128xf32>
    %cst_21 = arith.constant 0.000000e+00 : f32
    %42 = vector.broadcast %cst_21 : f32 to vector<32x128xf32>
    %43 = arith.subf %42, %21 : vector<32x128xf32>
    %44 = arith.mulf %43, %21 : vector<32x128xf32>
    %45 = math.exp %44 : vector<32x128xf32>
    %46 = arith.mulf %41, %45 : vector<32x128xf32>
    %cst_22 = arith.constant 1.000000e+00 : f32
    %47 = vector.broadcast %cst_22 : f32 to vector<32x128xf32>
    %48 = arith.subf %47, %46 : vector<32x128xf32>
    %49 = arith.mulf %20, %48 : vector<32x128xf32>
    %cst_23 = arith.constant 1.000000e+00 : f32
    %50 = vector.broadcast %cst_23 : f32 to vector<32x128xf32>
    %51 = arith.addf %50, %49 : vector<32x128xf32>
    %52 = arith.mulf %13, %51 : vector<32x128xf32>
    %c0_24 = arith.constant 0 : index
    %c0_25 = arith.constant 0 : index
    %53 = vector.load %arg5[%c0_24, %c0_25] : memref<128x64xf32, #tpu.memory_space<vmem>>, vector<128x64xf32>
    %cst_26 = arith.constant dense<0.000000e+00> : vector<32x64xf32>
    %54 = tpu.matmul %52, %53, %cst_26 {dimension_numbers = #tpu.dot_dimension_numbers<[1], [0], [0], [1], [0, 0, 1, 1], [], []>} : vector<32x128xf32>, vector<128x64xf32>, vector<32x64xf32> -> vector<32x64xf32>
    %c0_27 = arith.constant 0 : index
    %c0_28 = arith.constant 0 : index
    %55 = vector.load %arg6[%c0_27, %c0_28] : memref<1x64xf32, #tpu.memory_space<vmem>>, vector<1x64xf32>
    %56 = vector.broadcast %55 : vector<1x64xf32> to vector<32x64xf32>
    %57 = arith.addf %54, %56 : vector<32x64xf32>
    %c0_29 = arith.constant 0 : index
    %c2 = arith.constant 2 : index
    %58 = vector.load %arg2[%c0_29, %c2] : memref<32x6xf32, #tpu.memory_space<vmem>>, vector<32x1xf32>
    %59 = vector.broadcast %58 : vector<32x1xf32> to vector<32x64xf32>
    %60 = arith.mulf %57, %59 : vector<32x64xf32>
    %c0_30 = arith.constant 0 : index
    %c3 = arith.constant 3 : index
    %61 = vector.load %arg2[%c0_30, %c3] : memref<32x6xf32, #tpu.memory_space<vmem>>, vector<32x1xf32>
    %62 = vector.broadcast %61 : vector<32x1xf32> to vector<32x64xf32>
    %63 = arith.addf %60, %62 : vector<32x64xf32>
    %cst_31 = arith.constant 5.000000e-01 : f32
    %64 = vector.broadcast %cst_31 : f32 to vector<32x64xf32>
    %65 = arith.mulf %64, %63 : vector<32x64xf32>
    %cst_32 = arith.constant 0.707106769 : f32
    %66 = vector.broadcast %cst_32 : f32 to vector<32x64xf32>
    %67 = arith.mulf %63, %66 : vector<32x64xf32>
    %cst_33 = arith.constant 0.000000e+00 : f32
    %68 = vector.broadcast %cst_33 : f32 to vector<32x64xf32>
    %69 = arith.cmpf oge, %67, %68 : vector<32x64xf32>
    %cst_34 = arith.constant 1.000000e+00 : f32
    %cst_35 = arith.constant -1.000000e+00 : f32
    %70 = vector.broadcast %cst_34 : f32 to vector<32x64xf32>
    %71 = vector.broadcast %cst_35 : f32 to vector<32x64xf32>
    %72 = arith.select %69, %70, %71 : vector<32x64xi1>, vector<32x64xf32>
    %73 = math.absf %67 : vector<32x64xf32>
    %cst_36 = arith.constant 0.327591091 : f32
    %74 = vector.broadcast %cst_36 : f32 to vector<32x64xf32>
    %75 = arith.mulf %74, %73 : vector<32x64xf32>
    %cst_37 = arith.constant 1.000000e+00 : f32
    %76 = vector.broadcast %cst_37 : f32 to vector<32x64xf32>
    %77 = arith.addf %76, %75 : vector<32x64xf32>
    %cst_38 = arith.constant 1.000000e+00 : f32
    %78 = vector.broadcast %cst_38 : f32 to vector<32x64xf32>
    %79 = arith.divf %78, %77 : vector<32x64xf32>
    %cst_39 = arith.constant 1.06140542 : f32
    %80 = vector.broadcast %cst_39 : f32 to vector<32x64xf32>
    %81 = arith.mulf %80, %79 : vector<32x64xf32>
    %cst_40 = arith.constant -1.45315206 : f32
    %82 = vector.broadcast %cst_40 : f32 to vector<32x64xf32>
    %83 = arith.addf %81, %82 : vector<32x64xf32>
    %84 = arith.mulf %83, %79 : vector<32x64xf32>
    %cst_41 = arith.constant 1.42141378 : f32
    %85 = vector.broadcast %cst_41 : f32 to vector<32x64xf32>
    %86 = arith.addf %84, %85 : vector<32x64xf32>
    %87 = arith.mulf %86, %79 : vector<32x64xf32>
    %cst_42 = arith.constant -0.284496725 : f32
    %88 = vector.broadcast %cst_42 : f32 to vector<32x64xf32>
    %89 = arith.addf %87, %88 : vector<32x64xf32>
    %90 = arith.mulf %89, %79 : vector<32x64xf32>
    %cst_43 = arith.constant 0.254829586 : f32
    %91 = vector.broadcast %cst_43 : f32 to vector<32x64xf32>
    %92 = arith.addf %90, %91 : vector<32x64xf32>
    %93 = arith.mulf %92, %79 : vector<32x64xf32>
    %cst_44 = arith.constant 0.000000e+00 : f32
    %94 = vector.broadcast %cst_44 : f32 to vector<32x64xf32>
    %95 = arith.subf %94, %73 : vector<32x64xf32>
    %96 = arith.mulf %95, %73 : vector<32x64xf32>
    %97 = math.exp %96 : vector<32x64xf32>
    %98 = arith.mulf %93, %97 : vector<32x64xf32>
    %cst_45 = arith.constant 1.000000e+00 : f32
    %99 = vector.broadcast %cst_45 : f32 to vector<32x64xf32>
    %100 = arith.subf %99, %98 : vector<32x64xf32>
    %101 = arith.mulf %72, %100 : vector<32x64xf32>
    %cst_46 = arith.constant 1.000000e+00 : f32
    %102 = vector.broadcast %cst_46 : f32 to vector<32x64xf32>
    %103 = arith.addf %102, %101 : vector<32x64xf32>
    %104 = arith.mulf %65, %103 : vector<32x64xf32>
    %c0_47 = arith.constant 0 : index
    %c0_48 = arith.constant 0 : index
    %105 = vector.load %arg7[%c0_47, %c0_48] : memref<64x32xf32, #tpu.memory_space<vmem>>, vector<64x32xf32>
    %cst_49 = arith.constant dense<0.000000e+00> : vector<32x32xf32>
    %106 = tpu.matmul %104, %105, %cst_49 {dimension_numbers = #tpu.dot_dimension_numbers<[1], [0], [0], [1], [0, 0, 1, 1], [], []>} : vector<32x64xf32>, vector<64x32xf32>, vector<32x32xf32> -> vector<32x32xf32>
    %c0_50 = arith.constant 0 : index
    %c0_51 = arith.constant 0 : index
    %107 = vector.load %arg8[%c0_50, %c0_51] : memref<1x32xf32, #tpu.memory_space<vmem>>, vector<1x32xf32>
    %108 = vector.broadcast %107 : vector<1x32xf32> to vector<32x32xf32>
    %109 = arith.addf %106, %108 : vector<32x32xf32>
    %c0_52 = arith.constant 0 : index
    %c4 = arith.constant 4 : index
    %110 = vector.load %arg2[%c0_52, %c4] : memref<32x6xf32, #tpu.memory_space<vmem>>, vector<32x1xf32>
    %111 = vector.broadcast %110 : vector<32x1xf32> to vector<32x32xf32>
    %112 = arith.mulf %109, %111 : vector<32x32xf32>
    %c0_53 = arith.constant 0 : index
    %c5 = arith.constant 5 : index
    %113 = vector.load %arg2[%c0_53, %c5] : memref<32x6xf32, #tpu.memory_space<vmem>>, vector<32x1xf32>
    %114 = vector.broadcast %113 : vector<32x1xf32> to vector<32x32xf32>
    %115 = arith.addf %112, %114 : vector<32x32xf32>
    %cst_54 = arith.constant 5.000000e-01 : f32
    %116 = vector.broadcast %cst_54 : f32 to vector<32x32xf32>
    %117 = arith.mulf %116, %115 : vector<32x32xf32>
    %cst_55 = arith.constant 0.707106769 : f32
    %118 = vector.broadcast %cst_55 : f32 to vector<32x32xf32>
    %119 = arith.mulf %115, %118 : vector<32x32xf32>
    %cst_56 = arith.constant 0.000000e+00 : f32
    %120 = vector.broadcast %cst_56 : f32 to vector<32x32xf32>
    %121 = arith.cmpf oge, %119, %120 : vector<32x32xf32>
    %cst_57 = arith.constant 1.000000e+00 : f32
    %cst_58 = arith.constant -1.000000e+00 : f32
    %122 = vector.broadcast %cst_57 : f32 to vector<32x32xf32>
    %123 = vector.broadcast %cst_58 : f32 to vector<32x32xf32>
    %124 = arith.select %121, %122, %123 : vector<32x32xi1>, vector<32x32xf32>
    %125 = math.absf %119 : vector<32x32xf32>
    %cst_59 = arith.constant 0.327591091 : f32
    %126 = vector.broadcast %cst_59 : f32 to vector<32x32xf32>
    %127 = arith.mulf %126, %125 : vector<32x32xf32>
    %cst_60 = arith.constant 1.000000e+00 : f32
    %128 = vector.broadcast %cst_60 : f32 to vector<32x32xf32>
    %129 = arith.addf %128, %127 : vector<32x32xf32>
    %cst_61 = arith.constant 1.000000e+00 : f32
    %130 = vector.broadcast %cst_61 : f32 to vector<32x32xf32>
    %131 = arith.divf %130, %129 : vector<32x32xf32>
    %cst_62 = arith.constant 1.06140542 : f32
    %132 = vector.broadcast %cst_62 : f32 to vector<32x32xf32>
    %133 = arith.mulf %132, %131 : vector<32x32xf32>
    %cst_63 = arith.constant -1.45315206 : f32
    %134 = vector.broadcast %cst_63 : f32 to vector<32x32xf32>
    %135 = arith.addf %133, %134 : vector<32x32xf32>
    %136 = arith.mulf %135, %131 : vector<32x32xf32>
    %cst_64 = arith.constant 1.42141378 : f32
    %137 = vector.broadcast %cst_64 : f32 to vector<32x32xf32>
    %138 = arith.addf %136, %137 : vector<32x32xf32>
    %139 = arith.mulf %138, %131 : vector<32x32xf32>
    %cst_65 = arith.constant -0.284496725 : f32
    %140 = vector.broadcast %cst_65 : f32 to vector<32x32xf32>
    %141 = arith.addf %139, %140 : vector<32x32xf32>
    %142 = arith.mulf %141, %131 : vector<32x32xf32>
    %cst_66 = arith.constant 0.254829586 : f32
    %143 = vector.broadcast %cst_66 : f32 to vector<32x32xf32>
    %144 = arith.addf %142, %143 : vector<32x32xf32>
    %145 = arith.mulf %144, %131 : vector<32x32xf32>
    %cst_67 = arith.constant 0.000000e+00 : f32
    %146 = vector.broadcast %cst_67 : f32 to vector<32x32xf32>
    %147 = arith.subf %146, %125 : vector<32x32xf32>
    %148 = arith.mulf %147, %125 : vector<32x32xf32>
    %149 = math.exp %148 : vector<32x32xf32>
    %150 = arith.mulf %145, %149 : vector<32x32xf32>
    %cst_68 = arith.constant 1.000000e+00 : f32
    %151 = vector.broadcast %cst_68 : f32 to vector<32x32xf32>
    %152 = arith.subf %151, %150 : vector<32x32xf32>
    %153 = arith.mulf %124, %152 : vector<32x32xf32>
    %cst_69 = arith.constant 1.000000e+00 : f32
    %154 = vector.broadcast %cst_69 : f32 to vector<32x32xf32>
    %155 = arith.addf %154, %153 : vector<32x32xf32>
    %156 = arith.mulf %117, %155 : vector<32x32xf32>
    %cst_70 = arith.constant dense<0.000000e+00> : vector<32xf32>
    %157 = vector.multi_reduction <add>, %156, %cst_70 [0] : vector<32x32xf32> to vector<32xf32>
    %158 = vector.shape_cast %157 : vector<32xf32> to vector<1x32xf32>
    %cst_71 = arith.constant 3.200000e+01 : f32
    %159 = vector.broadcast %cst_71 : f32 to vector<1x32xf32>
    %160 = arith.divf %158, %159 : vector<1x32xf32>
    %c0_72 = arith.constant 0 : index
    %c0_73 = arith.constant 0 : index
    %161 = vector.load %arg9[%c0_72, %c0_73] : memref<32x8xf32, #tpu.memory_space<vmem>>, vector<32x8xf32>
    %cst_74 = arith.constant dense<0.000000e+00> : vector<1x8xf32>
    %162 = tpu.matmul %160, %161, %cst_74 {dimension_numbers = #tpu.dot_dimension_numbers<[1], [0], [0], [1], [0, 0, 1, 1], [], []>} : vector<1x32xf32>, vector<32x8xf32>, vector<1x8xf32> -> vector<1x8xf32>
    %c0_75 = arith.constant 0 : index
    %c0_76 = arith.constant 0 : index
    %163 = vector.load %arg10[%c0_75, %c0_76] : memref<1x8xf32, #tpu.memory_space<vmem>>, vector<1x8xf32>
    %164 = arith.addf %162, %163 : vector<1x8xf32>
    %c0_77 = arith.constant 0 : index
    %c0_78 = arith.constant 0 : index
    %c0_79 = arith.constant 0 : index
    %165 = vector.load %arg11[%c0_77, %c0_78, %c0_79] : memref<1x1x8xf32, #tpu.memory_space<vmem>>, vector<1x1x8xf32>
    %166 = vector.shape_cast %165 : vector<1x1x8xf32> to vector<1x8xf32>
    %167 = vector.shape_cast %164 : vector<1x8xf32> to vector<1x1x8xf32>
    tpu.vector_store %arg11[%c0_77, %c0_78, %c0_79], %167 {strides = array<i32>} : memref<1x1x8xf32, #tpu.memory_space<vmem>>, vector<1x1x8xf32>,
    return
  }
  func.func @transform_0(%arg0: i32) -> (i32, i32) {
    %c0_i32 = arith.constant 0 : i32
    %c0_i32_0 = arith.constant 0 : i32
    return %arg0, %c0_i32 : i32, i32
  }
  func.func @transform_1(%arg0: i32) -> (i32, i32) {
    %c0_i32 = arith.constant 0 : i32
    %c0_i32_0 = arith.constant 0 : i32
    %c0_i32_1 = arith.constant 0 : i32
    return %c0_i32, %c0_i32_0 : i32, i32
  }
  func.func @transform_2(%arg0: i32) -> (i32, i32) {
    %c0_i32 = arith.constant 0 : i32
    %c0_i32_0 = arith.constant 0 : i32
    %c0_i32_1 = arith.constant 0 : i32
    return %c0_i32, %c0_i32_0 : i32, i32
  }
  func.func @transform_3(%arg0: i32) -> (i32, i32) {
    %c0_i32 = arith.constant 0 : i32
    %c0_i32_0 = arith.constant 0 : i32
    %c0_i32_1 = arith.constant 0 : i32
    return %c0_i32, %c0_i32_0 : i32, i32
  }
  func.func @transform_4(%arg0: i32) -> (i32, i32) {
    %c0_i32 = arith.constant 0 : i32
    %c0_i32_0 = arith.constant 0 : i32
    %c0_i32_1 = arith.constant 0 : i32
    return %c0_i32, %c0_i32_0 : i32, i32
  }
  func.func @transform_5(%arg0: i32) -> (i32, i32) {
    %c0_i32 = arith.constant 0 : i32
    %c0_i32_0 = arith.constant 0 : i32
    %c0_i32_1 = arith.constant 0 : i32
    return %c0_i32, %c0_i32_0 : i32, i32
  }
  func.func @transform_6(%arg0: i32) -> (i32, i32) {
    %c0_i32 = arith.constant 0 : i32
    %c0_i32_0 = arith.constant 0 : i32
    %c0_i32_1 = arith.constant 0 : i32
    return %c0_i32, %c0_i32_0 : i32, i32
  }
  func.func @transform_7(%arg0: i32) -> (i32, i32) {
    %c0_i32 = arith.constant 0 : i32
    %c0_i32_0 = arith.constant 0 : i32
    %c0_i32_1 = arith.constant 0 : i32
    return %c0_i32, %c0_i32_0 : i32, i32
  }
  func.func @transform_8(%arg0: i32) -> (i32, i32) {
    %c0_i32 = arith.constant 0 : i32
    %c0_i32_0 = arith.constant 0 : i32
    %c0_i32_1 = arith.constant 0 : i32
    return %c0_i32, %c0_i32_0 : i32, i32
  }
  func.func @transform_9(%arg0: i32) -> (i32, i32) {
    %c0_i32 = arith.constant 0 : i32
    %c0_i32_0 = arith.constant 0 : i32
    %c0_i32_1 = arith.constant 0 : i32
    return %c0_i32, %c0_i32_0 : i32, i32
  }
  func.func @transform_10(%arg0: i32) -> (i32, i32, i32) {
    %c0_i32 = arith.constant 0 : i32
    %c0_i32_0 = arith.constant 0 : i32
    %c0_i32_1 = arith.constant 0 : i32
    return %arg0, %c0_i32, %c0_i32_0 : i32, i32, i32
  }
}

</mosaic_0001>

<bundles_post_ra>
// kernel: mlp_forward.1
= control target key start
LH: loop header
LB: loop body
LE: loop exit
PB: predicated region body
PF: predicated region fallthrough
CT: control target
= control target key end

     0   :  { %15 = vsyncpa [#allocation3], 0  ;;  %s2590_s0 = inlined_call_operand.vmem [shape: f32[128,256], index: 0, kind: input, shape index: {}]   ;;  %s2591_s1 = inlined_call_operand.vmem [shape: f32[32,6], index: 1, kind: input, shape index: {}]   ;;  %s2592_s2 = inlined_call_operand.vmem [shape: f32[256,128], index: 2, kind: input, shape index: {}]   ;;  %s2593_s3 = inlined_call_operand.vmem [shape: f32[1,128], index: 3, kind: input, shape index: {}]   ;;  %s2594_s4 = inlined_call_operand.vmem [shape: f32[128,64], index: 4, kind: input, shape index: {}]   ;;  %s2595_s5 = inlined_call_operand.hbm [shape: f32[1,64], index: 5, kind: input, shape index: {}]   ;;  %s2596_s6 = inlined_call_operand.vmem [shape: f32[64,32], index: 6, kind: input, shape index: {}]   ;;  %s2597_s7 = inlined_call_operand.hbm [shape: f32[1,32], index: 7, kind: input, shape index: {}]   ;;  %s2598_s8 = inlined_call_operand.vmem [shape: f32[32,8], index: 8, kind: input, shape index: {}]   ;;  %s2599_s9 = inlined_call_operand.hbm [shape: f32[1,8], index: 9, kind: input, shape index: {}]   ;;  %s2600_s10 = inlined_call_operand.hbm [shape: f32[4,1,8], index: 10, kind: output, shape index: {}]  }
   0x1   :  { %16 = vsyncpa [#allocation6], 0 }
   0x2   :  { %17 = vsyncpa [#allocation4], 0 }
   0x3   :  { %19 = vsyncpa [#allocation4 + $0x1], 0  ;;  %s2033_s13 = smov 0   ;;  %s2035_s14 = smov 0  }
   0x4   :  { %s2037_s15 = smov 0   ;;  %s2039_s16 = smov 0  }
   0x5 LB: > { %2608 = sst [smem:[#allocation12_spill]] %s1958_s15  ;;  %s2054_s17 = sadd.s32 4294967295, %s1962_s16   ;;  %s1962_s16 = sphi %s2039_s16, %s2625_s16   ;;  %s1958_s15 = sphi %s2037_s15, %s2627_s15   ;;  %s1954_s14 = sphi %s2035_s14, %s2629_s14   ;;  %s1950_s13 = sphi %s2033_s13, %s2628_s13  }
   0x6   : > { %s1400_s18 = sadd.s32 4294967294, %s1962_s16   ;;  %s2058_s19 = sadd.s32 1, %s1962_s16  }
   0x7   : > { %2609 = sst [smem:[#allocation13_spill]] %s2058_s19  ;;  %s247_s20 = sadd.s32 1, %s1958_s15 }
   0x8   : > { %s244_s21 = ssub.s32 %s1962_s16, %s2058_s19  ;;  %p257_p0 = scmp.ne.s32.totalorder %s1958_s15, %s1954_s14 }
   0x9   : > { %p245_p1 = scmp.eq.s32.totalorder %s244_s21, 0  ;;  %p258_p2 = scmp.eq.s32.totalorder %s2054_s17, 3 }
   0xa   : > { %p263_p3 = scmp.ne.s32.totalorder %s1954_s14, %s1950_s13  ;;  %p264_p4 = scmp.eq.s32.totalorder %s1400_s18, 3 }
   0xb   : > { %s2069_s22 = scalar_select %p245_p1, %s1958_s15, %s247_s20  }
   0xc   : > { %p2071_p5 = por %p258_p2, %p257_p0  ;;  %p2075_p6 = por %p264_p4, %p263_p3 }
   0xd   : > { %2610 = sst [smem:[#allocation14_spill]] %s2069_s22  ;;  %p1401_p7 = scmp.ge.s32.totalorder %s1962_s16, 1 }
   0xe   : > { %s2611_s23 = scalar_select %p2071_p5, 1, 0 }
   0xf   : > { %s2612_s24 = scalar_select %p2075_p6, 1, 0 }
  0x10   : > { %p271_p8 = scmp.lt.s32.totalorder %s1962_s16, 5  ;;  %p2602_p9 = scmp.eq.s32.totalorder %s2054_s17, 0 }
  0x11   : > { %2613 = sst [smem:[#allocation15_spill]] %s2612_s24  ;;  %s1964_s26 = smov [#allocation5]  }
  0x12   : > { %p2082_p10 = pnand %p1401_p7, %p271_p8  ;;  %s310_s27 = sshll.u32 %s1964_s26, 4  ;;  %s311_s27 = int_to_ptr.vmem [resolvable:$true] %s310_s27 }
  0x13   : > { %s1965_s28 = smov [#allocation2]   ;;  %s1966_s11 = smov [#allocation7]  }
  0x14   : > { %s2614_s25 = scalar_select %p2082_p10, 1, 0 }
  0x15   : > { %p1677_p11 = pneg %p2082_p10  ;;  %s296_s29 = sshll.u32 %s1965_s28, 4  ;;  %s2094_s29 = int_to_ptr.vmem [resolvable:$true] %s296_s29 }
  0x16   : > { %s324_s12 = sshll.u32 %s1966_s11, 4  ;;  %s1808_s21 = scalar_lea.hbm %s2597_s7, 16  ;;  %s2096_s12 = int_to_ptr.vmem [resolvable:$true] %s324_s12 }
  0x17   : > { %p2090_p12 = pnand %p2602_p9, %p1677_p11  ;;  %p1809_p13 = scmp.ne.s32.totalorder %s2597_s7, %s1808_s21 }
  0x18   : > { %p1815_p3 = scmp.lt.u32.totalorder %s1808_s21, %s2597_s7 }
  0x19   : > { %p2106_p0 = pneg %p2090_p12 }
  0x1b   : > { %p1811_p1 = pnand %p2106_p0, %p1809_p13 }
  0x1d   : > { %p1812_p2 = pneg %p1811_p1 }
  0x1f   : > { %p1817_p4 = pnand %p1815_p3, %p1812_p2 }
  0x21   : > { %1820 = shalt.err (!%p1817_p4)
}
  0x22   : > { %s1821_s18 = scalar_lea.vmem %s311_s27, 16  ;;  %s1828_s22 = scalar_lea.vmem %s311_s27, 32 }
  0x23   : > { %p1822_p7 = scmp.ne.s32.totalorder %s311_s27, %s1821_s18  ;;  %p1829_p9 = scmp.lt.s32.totalorder %s311_s27, %s311_s27 }
  0x24   : > { %p1830_p6 = scmp.lt.s32.totalorder %s1828_s22, %s1821_s18 }
  0x25   : > { %p1824_p8 = pnand %p1822_p7, %p2106_p0 }
  0x26   : > { %p1831_p5 = por %p1830_p6, %p1829_p9 }
  0x27   : > { %p1825_p11 = pneg %p1824_p8 }
  0x29   : > { %p1832_p10 = pnand %p1831_p5, %p1825_p11 }
  0x2b   : > { %1835 = shalt.err (!%p1832_p10)
}
  0x2c   : > { %1683 = dma.hbm_to_vmem [thread:$0]  (!%p2090_p12), %s2597_s7, 16, %s311_s27, [#allocation6]  }
  0x2d   : > { %s1836_s11 = scalar_lea.hbm %s2595_s5, 16 }
  0x2e   : > { %p1837_p13 = scmp.ne.s32.totalorder %s2595_s5, %s1836_s11  ;;  %p1843_p5 = scmp.lt.u32.totalorder %s1836_s11, %s2595_s5 }
  0x30   : > { %p1839_p1 = pnand %p1837_p13, %p2106_p0 }
  0x32   : > { %p1840_p6 = pneg %p1839_p1 }
  0x34   : > { %p1845_p9 = pnand %p1843_p5, %p1840_p6 }
  0x36   : > { %1848 = shalt.err (!%p1845_p9)
}
  0x37   : > { %s1849_s27 = scalar_lea.vmem %s2094_s29, 16  ;;  %s1856_s19 = scalar_lea.vmem %s2094_s29, 32 }
  0x38   : > { %p1850_p10 = scmp.ne.s32.totalorder %s2094_s29, %s1849_s27  ;;  %p1857_p4 = scmp.lt.s32.totalorder %s2094_s29, %s2094_s29 }
  0x39   : > { %p1858_p7 = scmp.lt.s32.totalorder %s1856_s19, %s1849_s27 }
  0x3a   : > { %p1852_p2 = pnand %p1850_p10, %p2106_p0 }
  0x3b   : > { %p1859_p8 = por %p1858_p7, %p1857_p4 }
  0x3c   : > { %p1853_p3 = pneg %p1852_p2 }
  0x3e   : > { %p1860_p11 = pnand %p1859_p8, %p1853_p3 }
  0x40   : > { %1863 = shalt.err (!%p1860_p11)
}
  0x41   : > { %1680 = dma.hbm_to_vmem [thread:$0]  (!%p2090_p12), %s2595_s5, 16, %s2094_s29, [#allocation3]  }
  0x42   : > { %s1864_s21 = scalar_lea.hbm %s2599_s9, 16 }
  0x43   : > { %p1865_p13 = scmp.ne.s32.totalorder %s2599_s9, %s1864_s21  ;;  %p1871_p5 = scmp.lt.u32.totalorder %s1864_s21, %s2599_s9 }
  0x45   : > { %p1867_p1 = pnand %p1865_p13, %p2106_p0 }
  0x47   : > { %p1868_p6 = pneg %p1867_p1 }
  0x49   : > { %p1873_p9 = pnand %p1871_p5, %p1868_p6 }
  0x4b   : > { %1876 = shalt.err (!%p1873_p9)
}
  0x4c   : > { %s1877_s29 = scalar_lea.vmem %s2096_s12, 16  ;;  %s1884_s19 = scalar_lea.vmem %s2096_s12, 32 }
  0x4d   : > { %p1878_p10 = scmp.ne.s32.totalorder %s2096_s12, %s1877_s29  ;;  %p1885_p4 = scmp.lt.s32.totalorder %s2096_s12, %s2096_s12 }
  0x4e   : > { %p1886_p7 = scmp.lt.s32.totalorder %s1884_s19, %s1877_s29 }
  0x4f   : > { %p1880_p2 = pnand %p1878_p10, %p2106_p0 }
  0x50   : > { %p1887_p8 = por %p1886_p7, %p1885_p4 }
  0x51   : > { %p1881_p3 = pneg %p1880_p2 }
  0x53   : > { %p1888_p11 = pnand %p1887_p8, %p1881_p3 }
  0x55   : > { %1891 = shalt.err (!%p1888_p11)
}
  0x56   : > { %1686 = dma.hbm_to_vmem [thread:$0]  (!%p2090_p12), %s2599_s9, 16, %s2096_s12, [#allocation6]  }
  0x57   : > { %p2617_p13 = scmp.ne.s32.totalorder %s2614_s25, 0 }
  0x58   : > { %p2618_p0 = scmp.eq.s32.totalorder (!%p2617_p13), %s2054_s17, 0 }
  0x59   : > { %347 = sbr.rel (%p2617_p13) target bundleno = 1196 (0x4ac), region = 60 }
  0x60   : > { %1937 = dma.done.wait (%p2618_p0), [#allocation3], 16   ;;  %p2619_p1 = pmov %p2618_p0 }
  0x61   : > { %p2620_p6 = pmov %p2618_p0 }
  0x62   : > { %1939 = vsyncadd (%p2619_p1), [#allocation3], 4294967280 }
  0x63   : > { %1941 = dma.done.wait (%p2620_p6), [#allocation6], 32   ;;  %p2621_p5 = pmov %p2618_p0 }
  0x64   : > { %s1410_s30 = sshll.u32 %s2054_s17, 2  ;;  %v1967_v0 = vmov 0   ;;  %v1968_v1 = vmov 1   ;;  %v424_v2 = vld [vmem:[%s2592_s2 + $0x80] sm:$0xff]  ;;  %v425_v3 = vld [vmem:[%s2592_s2 + $0x88] sm:$0xff]  ;;  %v426_v7 = vld [vmem:[%s2592_s2 + $0x90] sm:$0xff] }
  0x65   : > { %1943 = vsyncadd (%p2621_p5), [#allocation6], 4294967264  ;;  %1743 = vset.pattern.permute.xlu0 %v1967_v0  ;;  %1744 = vset.pattern.permute.xlu1 %v1968_v1  ;;  %p394_p12 = scmp.lt.s32.totalorder %s1410_s30, 15  ;;  %v408_v4 = vld [vmem:[%s2592_s2] sm:$0xff]  ;;  %v1577_v5 = vpack.c.bf16 %v425_v3, %v424_v2  ;;  %v409_v6 = vld [vmem:[%s2592_s2 + $0x8] sm:$0xff]  ;;  %vm959_vm6 = vcmask 523264  }
  0x66   : > { %v427_v8 = vld [vmem:[%s2592_s2 + $0x98] sm:$0xff]  ;;  %v1579_v9 = vpack.c.bf16 %v409_v6, %v408_v4  ;;  %v410_v11 = vld [vmem:[%s2592_s2 + $0x10] sm:$0xff]  ;;  %v428_v13 = vld [vmem:[%s2592_s2 + $0xa0] sm:$0xff]  ;;  %vm1975_vm9 = vmmov 0   ;;  %vm1205_vm12 = vcmask 261120   ;;  %s391_s26 = sand.u32 1, %s1954_s14  }
  0x67   : > { %s2631_s30 = smov (!%p394_p12, %s1410_s30), 15  ;;  %v1581_v10 = vpack.c.bf16 %v427_v8, %v426_v7  ;;  %v411_v12 = vld [vmem:[%s2592_s2 + $0x18] sm:$0xff]  ;;  %1578 = vmatprep.subr.bf16.mxu0 %v1577_v5  ;;  %v429_v14 = vld [vmem:[%s2592_s2 + $0xa8] sm:$0xff]  ;;  %v412_v17 = vld [vmem:[%s2592_s2 + $0x20] sm:$0xff]  ;;  %s1421_s15 = sshll.u32 %s2054_s17, 4  ;;  %vm1299_vm15 = vcmask 57344  }
  0x68   : > { %1580 = vmatpush3.bf16.msra.mxu0 %v1579_v9  ;;  %v1583_v15 = vpack.c.bf16 %v411_v12, %v410_v11  ;;  %s1424_s11 = sshll.u32 %s2631_s30, 4  ;;  %v1585_v16 = vpack.c.bf16 %v429_v14, %v428_v13  ;;  %v413_v18 = vld [vmem:[%s2592_s2 + $0x28] sm:$0xff]  ;;  %v430_v19 = vld [vmem:[%s2592_s2 + $0xb0] sm:$0xff]  ;;  %v431_v20 = vld [vmem:[%s2592_s2 + $0xb8] sm:$0xff]  ;;  %s392_s21 = scalar_lea.vmem [#allocation8], %s391_s26 }
  0x69   : > { %1582 = vmatprep.subr.bf16.mxu0 %v1581_v10  ;;  %s2228_s28 = scalar_lea.vmem %s2590_s0, %s1424_s11  ;;  %v1587_v21 = vpack.c.bf16 %v413_v18, %v412_v17  ;;  %v1589_v22 = vpack.c.bf16 %v431_v20, %v430_v19  ;;  %v414_v23 = vld [vmem:[%s2592_s2 + $0x30] sm:$0xff]  ;;  %v415_v24 = vld [vmem:[%s2592_s2 + $0x38] sm:$0xff]  ;;  %v432_v25 = vld [vmem:[%s2592_s2 + $0xc0] sm:$0xff]  ;;  %s1314_s18 = sshll.u32 %s392_s21, 4  ;;  %s2550_s18 = int_to_ptr.vmem [resolvable:$true] %s1314_s18 }
  0x6a   : > { %v433_v26 = vld [vmem:[%s2592_s2 + $0xc8] sm:$0xff]  ;;  %v1591_v28 = vpack.c.bf16 %v415_v24, %v414_v23  ;;  %v416_v30 = vld [vmem:[%s2592_s2 + $0x40] sm:$0xff]  ;;  %v434_v33 = vld [vmem:[%s2592_s2 + $0xd0] sm:$0xff]  ;;  %v1970_v23 = vmov 3   ;;  %s2548_s29 = scalar_lea.hbm %s2600_s10, %s1421_s15  ;;  %s1302_s11 = scalar_lea.sflag [#allocation4], %s391_s26 }
  0x6b   : > { %v401_v27 = vld [vmem:[%s2228_s28 + $0x8] sm:$0xff]  ;;  %v1593_v29 = vpack.c.bf16 %v433_v26, %v432_v25  ;;  %v2252_v32 = vld [vmem:[%s2591_s1] sm:$0xff]  ;;  %v435_v34 = vld [vmem:[%s2592_s2 + $0xd8] sm:$0xff]  ;;  %s1892_s19 = scalar_lea.vmem %s2550_s18, 16  ;;  %p2622_p10 = scmp.ne.s32.totalorder %s2611_s23, 0 }
  0x6c   : > { %1584 = vmatpush3.bf16.msra.mxu0 %v1583_v15  ;;  %511 = vmatprep.mubr.f32.mxu0 %v401_v27  ;;  %v417_v31 = vld [vmem:[%s2592_s2 + $0x48] sm:$0xff]  ;;  %v1597_v37 = vpack.c.bf16 %v435_v34, %v434_v33  ;;  %v418_v38 = vld [vmem:[%s2592_s2 + $0x50] sm:$0xff]  ;;  %v419_v39 = vld [vmem:[%s2592_s2 + $0x58] sm:$0xff]  ;;  %p1893_p9 = scmp.ne.s32.totalorder %s2550_s18, %s1892_s19  ;;  %s1977_s17 = smov [#allocation8]  }
  0x6d   : > { %1586 = vmatprep.subr.bf16.mxu0 %v1585_v16  ;;  %538 = vperm.xlu0 %1743, %v2252_v32   ;;  %v2265_v35 = vld [vmem:[%s2591_s1 + $0x8] sm:$0xff]  ;;  %v1595_v36 = vpack.c.bf16 %v417_v31, %v416_v30  ;;  %v436_v40 = vld [vmem:[%s2592_s2 + $0xe0] sm:$0xff]  ;;  %v2284_v42 = vld [vmem:[%s2591_s1 + $0x10] sm:$0xff]  ;;  %v1599_v43 = vpack.c.bf16 %v419_v39, %v418_v38  ;;  %s1896_s24 = sshll.u32 %s1977_s17, 4  ;;  %s1897_s24 = int_to_ptr.vmem [resolvable:$false] %s1896_s24 }
  0x6e   : > { %561 = vperm.xlu1 %1744, %v2252_v32   ;;  %v437_v41 = vld [vmem:[%s2592_s2 + $0xe8] sm:$0xff]  ;;  %v2289_v44 = vld [vmem:[%s2591_s1 + $0x18] sm:$0xff]  ;;  %v420_v46 = vld [vmem:[%s2592_s2 + $0x60] sm:$0xff]  ;;  %p1894_p2 = pnand %p1893_p9, %p2622_p10  ;;  %p1899_p4 = scmp.lt.s32.totalorder %s2550_s18, %s1897_s24 }
  0x6f   : > { %v1601_v45 = vpack.c.bf16 %v437_v41, %v436_v40  ;;  %v421_v47 = vld [vmem:[%s2592_s2 + $0x68] sm:$0xff]  ;;  %v438_v48 = vld [vmem:[%s2592_s2 + $0xf0] sm:$0xff]  ;;  %v439_v49 = vld [vmem:[%s2592_s2 + $0xf8] sm:$0xff] }
  0x70   : > { %1588 = vmatpush3.bf16.msra.mxu0 %v1587_v21  ;;  %v1603_v50 = vpack.c.bf16 %v421_v47, %v420_v46  ;;  %v1605_v51 = vpack.c.bf16 %v439_v49, %v438_v48  ;;  %v422_v52 = vld [vmem:[%s2592_s2 + $0x70] sm:$0xff]  ;;  %v423_v53 = vld [vmem:[%s2592_s2 + $0x78] sm:$0xff]  ;;  %v400_v55 = vld [vmem:[%s2228_s28] sm:$0xff]  ;;  %p1895_p3 = pneg %p1894_p2 }
  0x71   : > { %1590 = vmatprep.subr.bf16.mxu0 %v1589_v22  ;;  %543 = vperm.xlu0 %1743, %v2265_v35   ;;  %v1607_v54 = vpack.c.bf16 %v423_v53, %v422_v52  ;;  %v403_v56 = vld [vmem:[%s2228_s28 + $0x18] sm:$0xff]  ;;  %v402_v57 = vld [vmem:[%s2228_s28 + $0x10] sm:$0xff]  ;;  %v405_v58 = vld [vmem:[%s2228_s28 + $0x28] sm:$0xff]  ;;  %v1969_v22 = vmov 2  }
  0x72   : > { %565 = vperm.xlu1 %1744, %v2265_v35   ;;  %v404_v59 = vld [vmem:[%s2228_s28 + $0x20] sm:$0xff]  ;;  %v407_v60 = vld [vmem:[%s2228_s28 + $0x38] sm:$0xff]  ;;  %v406_v61 = vld [vmem:[%s2228_s28 + $0x30] sm:$0xff]  ;;  %s1898_s28 = scalar_lea.vmem %s1897_s24, 32 }
  0x73   : > { %v688_v62 = vld [vmem:[%s2594_s4] sm:$0xff]  ;;  %v689_v63 = vld [vmem:[%s2594_s4 + $0x8] sm:$0xff]  ;;  %v691_v2 = vld [vmem:[%s2594_s4 + $0x18] sm:$0xff]  ;;  %p1900_p7 = scmp.lt.s32.totalorder %s1898_s28, %s1892_s19 }
  0x74   : > { %1592 = vmatpush3.bf16.msra.mxu0 %v1591_v28  ;;  %v692_v4 = vld [vmem:[%s2594_s4 + $0x20] sm:$0xff]  ;;  %v693_v5 = vld [vmem:[%s2594_s4 + $0x28] sm:$0xff]  ;;  %v694_v6 = vld [vmem:[%s2594_s4 + $0x30] sm:$0xff] }
  0x75   : > { %1594 = vmatprep.subr.bf16.mxu0 %v1593_v29  ;;  %548 = vperm.xlu0 %1743, %v2284_v42   ;;  %v1617_v7 = vpack.c.bf16 %v693_v5, %v692_v4  ;;  %v695_v8 = vld [vmem:[%s2594_s4 + $0x38] sm:$0xff]  ;;  %v696_v10 = vld [vmem:[%s2594_s4 + $0x40] sm:$0xff]  ;;  %v697_v11 = vld [vmem:[%s2594_s4 + $0x48] sm:$0xff]  ;;  %p1901_p8 = por %p1900_p7, %p1899_p4 }
  0x76   : > { %1745 = vset.pattern.permute.xlu1 %v1967_v0  ;;  %v1609_v0 = vpack.c.bf16 %v689_v63, %v688_v62  ;;  %v1621_v9 = vpack.c.bf16 %v695_v8, %v694_v6  ;;  %v1625_v12 = vpack.c.bf16 %v697_v11, %v696_v10  ;;  %v698_v13 = vld [vmem:[%s2594_s4 + $0x50] sm:$0xff]  ;;  %v699_v14 = vld [vmem:[%s2594_s4 + $0x58] sm:$0xff]  ;;  %v700_v16 = vld [vmem:[%s2594_s4 + $0x60] sm:$0xff] }
  0x77   : > { %553 = vperm.xlu1 %1745, %v2289_v44   ;;  %v1629_v15 = vpack.c.bf16 %v699_v14, %v698_v13  ;;  %v701_v17 = vld [vmem:[%s2594_s4 + $0x68] sm:$0xff]  ;;  %v702_v19 = vld [vmem:[%s2594_s4 + $0x70] sm:$0xff]  ;;  %v703_v20 = vld [vmem:[%s2594_s4 + $0x78] sm:$0xff]  ;;  %p1902_p11 = pnand %p1901_p8, %p1895_p3 }
  0x78   : > { %1596 = vmatpush3.bf16.msra.mxu0 %v1595_v36  ;;  %1610 = vmatprep.subr.bf16.mxu1 %v1609_v0  ;;  %v1633_v18 = vpack.c.bf16 %v701_v17, %v700_v16  ;;  %v1637_v21 = vpack.c.bf16 %v703_v20, %v702_v19  ;;  %v1413_v27 = vld [vmem:[%s2593_s3] ss:$0 sm:$0xff] }
  0x79   : > { %1598 = vmatprep.subr.bf16.mxu0 %v1597_v37  ;;  %1746 = vset.pattern.permute.xlu0 %v1968_v1 }
  0x7a   : > { %569 = vperm.xlu0 %1746, %v2284_v42   ;;  %1612 = vmatpush3.bf16.msra.mxu1 %v1609_v0 }
  0x7b   : > { %1747 = vset.pattern.permute.xlu1 %v1968_v1  ;;  %v690_v1 = vld [vmem:[%s2594_s4 + $0x10] sm:$0xff] }
  0x7c   : > { %1600 = vmatpush3.bf16.msra.mxu0 %v1599_v43  ;;  %573 = vperm.xlu1 %1747, %v2289_v44   ;;  %v1613_v3 = vpack.c.bf16 %v691_v2, %v690_v1 }
  0x7d   : > { %1602 = vmatprep.subr.bf16.mxu0 %v1601_v45 }
  0x7e   : > { %1614 = vmatprep.subr.bf16.mxu1 %v1613_v3  ;;  %1749 = vset.pattern.permute.xlu0 %v1969_v22 }
  0x7f   : > { %1616 = vmatpush3.bf16.msra.mxu1 %v1613_v3  ;;  %801 = vperm.xlu0 %1749, %v2265_v35  }
  0x80   : > { %1604 = vmatpush3.bf16.msra.mxu0 %v1603_v50  ;;  %1618 = vmatprep.subr.bf16.mxu1 %v1617_v7 }
  0x81   : > { %1606 = vmatprep.subr.bf16.mxu0 %v1605_v51  ;;  %1748 = vset.pattern.permute.xlu1 %v1969_v22 }
  0x82   : > { %797 = vperm.xlu1 %1748, %v2252_v32  }
  0x83   : > { %1620 = vmatpush3.bf16.msra.mxu1 %v1617_v7  ;;  %805 = vperm.xlu0 %1749, %v2284_v42  }
  0x84   : > { %1608 = vmatpush3.bf16.msra.mxu0 %v1607_v54  ;;  %1622 = vmatprep.subr.bf16.mxu1 %v1621_v9 }
  0x86   : > { %1750 = vset.pattern.permute.xlu1 %v1970_v23 }
  0x87   : > { %512 = vmatmul.mubr.f32.vlgmr.msra.gmra.mrb[0].mxu0 %v400_v55  ;;  %1624 = vmatpush3.bf16.msra.mxu1 %v1621_v9 }
  0x88   : > { %516 = vmatprep.mubr.f32.mxu0 %v403_v56  ;;  %1626 = vmatprep.subr.bf16.mxu1 %v1625_v12 }
  0x89   : > { %817 = vperm.xlu1 %1750, %v2252_v32   ;;  %1752 = vset.pattern.permute.xlu0 %v1970_v23 }
  0x8a   : > { %825 = vperm.xlu0 %1752, %v2284_v42  }
  0x8b   : > { %517 = vmatmul.mubr.f32.gmra.mrb[2].mxu0 %v402_v57  ;;  %1628 = vmatpush3.bf16.msra.mxu1 %v1625_v12 }
  0x8c   : > { %521 = vmatprep.mubr.f32.mxu0 %v405_v58  ;;  %1630 = vmatprep.subr.bf16.mxu1 %v1629_v15 }
  0x8d   : > { %821 = vperm.xlu1 %1750, %v2265_v35  }
  0x8f   : > { %522 = vmatmul.mubr.f32.gmra.mrb[4].mxu0 %v404_v59  ;;  %1632 = vmatpush3.bf16.msra.mxu1 %v1629_v15 }
  0x90   : > { %526 = vmatprep.mubr.f32.mxu0 %v407_v60  ;;  %1634 = vmatprep.subr.bf16.mxu1 %v1633_v18 }
  0x91   : > { %1751 = vset.pattern.permute.xlu1 %v1969_v22 }
  0x92   : > { %809 = vperm.xlu1 %1751, %v2289_v44  }
  0x93   : > { %527 = vmatmul.mubr.f32.gmra.mrb[6].mxu0 %v406_v61  ;;  %1636 = vmatpush3.bf16.msra.mxu1 %v1633_v18 }
  0x94   : > { %1638 = vmatprep.subr.bf16.mxu1 %v1637_v21 }
  0x96   : > { %1753 = vset.pattern.permute.xlu1 %v1970_v23 }
  0x97   : > { %1640 = vmatpush3.bf16.msra.mxu1 %v1637_v21  ;;  %829 = vperm.xlu1 %1753, %v2289_v44  }
  0xec   : > { %v539_v24 = vpop.permute.xlu0 %538 }
  0xed   : > { %v562_v26 = vpop.permute.xlu1 %561 }
  0xf0   : > { %v544_v30 = vpop.permute.xlu0 %543 }
  0xf1   : > { %v566_v38 = vpop.permute.xlu1 %565 }
  0xf4   : > { %v549_v43 = vpop.permute.xlu0 %548 }
  0xf6   : > { %v554_v49 = vpop.permute.xlu1 %553 }
  0xf9   : > { %v570_v55 = vpop.permute.xlu0 %569 }
  0xfb   : > { %v574_v0 = vpop.permute.xlu1 %573 }
 0x15a   : > { %v1457_v25 = vpop.f32.mrb[0].mxu0 }
 0x15b   : > { %v1458_v28 = vpop.f32.mrb[1].mxu0 }
 0x15c   : > { %v1459_v29 = vadd.f32 %v1458_v28, %v1457_v25 }
 0x15e   : > { %v514_v31 = vadd.f32 %v1459_v29, %v1413_v27  ;;  %v1460_v33 = vpop.f32.mrb[2].mxu0 }
 0x15f   : > { %v1461_v34 = vpop.f32.mrb[3].mxu0 }
 0x160   : > { %v556_v36 = vmul.f32 %v539_v24, %v514_v31  ;;  %v1462_v37 = vadd.f32 %v1461_v34, %v1460_v33 }
 0x162   : > { %v519_v39 = vadd.f32 %v1462_v37, %v1413_v27  ;;  %v1463_v40 = vpop.f32.mrb[4].mxu0  ;;  %v2382_v41 = vadd.f32 %v562_v26, %v556_v36 }
 0x163   : > { %v1464_v45 = vpop.f32.mrb[5].mxu0 }
 0x164   : > { %v557_v46 = vmul.f32 %v544_v30, %v519_v39  ;;  %v1465_v47 = vadd.f32 %v1464_v45, %v1463_v40  ;;  %v2385_v48 = vmul.f32 0.70710677, %v2382_v41 }
 0x166   : > { %v2387_v50 = vadd.f32 %v566_v38, %v557_v46  ;;  %v524_v51 = vadd.f32 %v1465_v47, %v1413_v27  ;;  %v1466_v52 = vpop.f32.mrb[6].mxu0  ;;  %v596_v53 = vand.u32 2147483647, %v2385_v48  ;;  %vm588_vm0 = vcmp.ge.f32.partialorder %v2385_v48, 0.0 }
 0x167   : > { %v1467_v54 = vpop.f32.mrb[7].mxu0  ;;  %v580_v48 = vmul.f32 0.5, %v2382_v41 }
 0x168   : > { %v2391_v56 = vmul.f32 0.70710677, %v2387_v50  ;;  %v1468_v57 = vadd.f32 %v1467_v54, %v1466_v52  ;;  %v558_v58 = vmul.f32 %v549_v43, %v524_v51  ;;  %v600_v59 = vmul.f32 0.3275911, %v596_v53 }
 0x169   : > { %v652_v11 = vsub.f32 0.0, %v596_v53 }
 0x16a   : > { %v597_v60 = vand.u32 2147483647, %v2391_v56  ;;  %v529_v61 = vadd.f32 %v1468_v57, %v1413_v27  ;;  %v2394_v62 = vadd.f32 %v570_v55, %v558_v58  ;;  %v604_v63 = vadd.f32 1.0, %v600_v59 }
 0x16b   : > { %v656_v16 = vmul.f32 %v652_v11, %v596_v53  ;;  %v1971_v11 = vmov -1.0   ;;  %vm589_vm1 = vcmp.ge.f32.partialorder %v2391_v56, 0.0  ;;  %v581_v56 = vmul.f32 0.5, %v2387_v50 }
 0x16c   : > { %v601_v1 = vmul.f32 0.3275911, %v597_v60  ;;  %v559_v2 = vmul.f32 %v554_v49, %v529_v61  ;;  %v2397_v3 = vmul.f32 0.70710677, %v2394_v62  ;;  %1760 = vrcp.f32 %v604_v63 }
 0x16d   : > { %v653_v13 = vsub.f32 0.0, %v597_v60  ;;  %v660_v22 = vmul.f32 1.442695, %v656_v16 }
 0x16e   : > { %v605_v4 = vadd.f32 1.0, %v601_v1  ;;  %v2399_v5 = vadd.f32 %v574_v0, %v559_v2  ;;  %v598_v6 = vand.u32 2147483647, %v2397_v3  ;;  %vm590_vm2 = vcmp.ge.f32.partialorder %v2397_v3, 0.0 }
 0x16f   : > { %v657_v19 = vmul.f32 %v653_v13, %v597_v60  ;;  %v582_v3 = vmul.f32 0.5, %v2394_v62  ;;  %v945_v62 = vld [vmem:[%s2596_s6 + $0x8] sm:$0xff] }
 0x170   : > { %1762 = vrcp.f32 %v605_v4  ;;  %v602_v7 = vmul.f32 0.3275911, %v598_v6  ;;  %v2403_v8 = vmul.f32 0.70710677, %v2399_v5  ;;  %v654_v21 = vsub.f32 0.0, %v598_v6 }
 0x171   : > { %v662_v26 = vmul.f32 1.442695, %v657_v19 }
 0x172   : > { %v606_v9 = vadd.f32 1.0, %v602_v7  ;;  %v599_v10 = vand.u32 2147483647, %v2403_v8  ;;  %v658_v29 = vmul.f32 %v654_v21, %v598_v6  ;;  %vm591_vm3 = vcmp.ge.f32.partialorder %v2403_v8, 0.0  ;;  %v944_v8 = vld [vmem:[%s2596_s6] sm:$0xff] }
 0x174   : > { %1764 = vrcp.f32 %v606_v9  ;;  %v603_v12 = vmul.f32 0.3275911, %v599_v10  ;;  %v655_v30 = vsub.f32 0.0, %v599_v10  ;;  %v664_v40 = vmul.f32 1.442695, %v658_v29 }
 0x176   : > { %v1761_v14 = vpop.eup %1760  ;;  %v607_v15 = vadd.f32 1.0, %v603_v12  ;;  %v659_v43 = vmul.f32 %v655_v30, %v599_v10  ;;  %v592_v12 = vsel %vm588_vm0, 1.0, %v1971_v11 }
 0x177   : > { %v616_v17 = vmul.f32 1.0614054, %v1761_v14 }
 0x178   : > { %1766 = vrcp.f32 %v607_v15  ;;  %v666_v55 = vmul.f32 1.442695, %v659_v43  ;;  %v583_v43 = vmul.f32 0.5, %v2399_v5  ;;  %v947_v5 = vld [vmem:[%s2596_s6 + $0x18] sm:$0xff] }
 0x179   : > { %v620_v20 = vadd.f32 -1.4531521, %v616_v17  ;;  %1768 = vpow2.f32 %v660_v22 }
 0x17a   : > { %v1763_v18 = vpop.eup %1762  ;;  %1770 = vpow2.f32 %v662_v26 }
 0x17b   : > { %v617_v23 = vmul.f32 1.0614054, %v1763_v18  ;;  %v624_v24 = vmul.f32 %v1761_v14, %v620_v20  ;;  %1772 = vpow2.f32 %v664_v40  ;;  %v593_v20 = vsel %vm589_vm1, 1.0, %v1971_v11 }
 0x17c   : > { %1774 = vpow2.f32 %v666_v55  ;;  %v951_v55 = vld [vmem:[%s2596_s6 + $0x38] sm:$0xff] }
 0x17d   : > { %v621_v25 = vadd.f32 -1.4531521, %v617_v23  ;;  %v628_v27 = vadd.f32 1.4214138, %v624_v24 }
 0x17e   : > { %v1765_v28 = vpop.eup %1764 }
 0x17f   : > { %v625_v31 = vmul.f32 %v1763_v18, %v621_v25  ;;  %v632_v33 = vmul.f32 %v1761_v14, %v628_v27  ;;  %v618_v34 = vmul.f32 1.0614054, %v1765_v28 }
 0x181   : > { %v629_v36 = vadd.f32 1.4214138, %v625_v31  ;;  %v636_v37 = vadd.f32 -0.28449672, %v632_v33  ;;  %v622_v38 = vadd.f32 -1.4531521, %v618_v34 }
 0x182   : > { %v1767_v39 = vpop.eup %1766  ;;  %v594_v31 = vsel %vm590_vm2, 1.0, %v1971_v11 }
 0x183   : > { %v633_v45 = vmul.f32 %v1763_v18, %v629_v36  ;;  %v640_v46 = vmul.f32 %v1761_v14, %v636_v37  ;;  %v626_v47 = vmul.f32 %v1765_v28, %v622_v38  ;;  %v619_v49 = vmul.f32 1.0614054, %v1767_v39  ;;  %v1769_v61 = vpop.eup %1768 }
 0x184   : > { %v1771_v6 = vpop.eup %1770  ;;  %v595_v38 = vsel %vm591_vm3, 1.0, %v1971_v11 }
 0x185   : > { %v637_v51 = vadd.f32 -0.28449672, %v633_v45  ;;  %v644_v52 = vadd.f32 0.2548296, %v640_v46  ;;  %v630_v53 = vadd.f32 1.4214138, %v626_v47  ;;  %v1773_v22 = vpop.eup %1772  ;;  %v1641_v46 = vpack.c.bf16 %v945_v62, %v944_v8 }
 0x186   : > { %v623_v54 = vadd.f32 -1.4531521, %v619_v49  ;;  %v1775_v41 = vpop.eup %1774  ;;  %v946_v47 = vld [vmem:[%s2596_s6 + $0x10] sm:$0xff] }
 0x187   : > { %v641_v57 = vmul.f32 %v1763_v18, %v637_v51  ;;  %v648_v58 = vmul.f32 %v1761_v14, %v644_v52  ;;  %v634_v59 = vmul.f32 %v1765_v28, %v630_v53  ;;  %1642 = vmatprep.subr.bf16.mxu0 %v1641_v46  ;;  %v1645_v49 = vpack.c.bf16 %v947_v5, %v946_v47  ;;  %v948_v51 = vld [vmem:[%s2596_s6 + $0x20] sm:$0xff]  ;;  %v949_v52 = vld [vmem:[%s2596_s6 + $0x28] sm:$0xff] }
 0x188   : > { %v627_v60 = vmul.f32 %v1767_v39, %v623_v54  ;;  %1644 = vmatpush3.bf16.msra.mxu0 %v1641_v46  ;;  %v1649_v53 = vpack.c.bf16 %v949_v52, %v948_v51  ;;  %v950_v54 = vld [vmem:[%s2596_s6 + $0x30] sm:$0xff] }
 0x189   : > { %v645_v63 = vadd.f32 0.2548296, %v641_v57  ;;  %v668_v0 = vmul.f32 %v1769_v61, %v648_v58  ;;  %v638_v1 = vadd.f32 -0.28449672, %v634_v59  ;;  %1646 = vmatprep.subr.bf16.mxu0 %v1645_v49  ;;  %v1653_v57 = vpack.c.bf16 %v951_v55, %v950_v54 }
 0x18a   : > { %v631_v2 = vadd.f32 1.4214138, %v627_v60  ;;  %v1972_v58 = vmov 4   ;;  %v1973_v59 = vmov 5   ;;  %v798_v60 = vpop.permute.xlu1 %797 }
 0x18b   : > { %v649_v4 = vmul.f32 %v1763_v18, %v645_v63  ;;  %v672_v7 = vsub.f32 1.0, %v668_v0  ;;  %v642_v9 = vmul.f32 %v1765_v28, %v638_v1  ;;  %1754 = vset.pattern.permute.xlu1 %v1972_v58  ;;  %1755 = vset.pattern.permute.xlu0 %v1972_v58  ;;  %v1414_v63 = vld [vmem:[#allocation2] ss:$0 sm:$0xff] }
 0x18c   : > { %v635_v10 = vmul.f32 %v1767_v39, %v631_v2  ;;  %1648 = vmatpush3.bf16.msra.mxu0 %v1645_v49  ;;  %1058 = vperm.xlu1 %1754, %v2252_v32  }
 0x18d   : > { %v669_v13 = vmul.f32 %v1771_v6, %v649_v4  ;;  %v676_v14 = vmul.f32 %v672_v7, %v592_v12  ;;  %v646_v15 = vadd.f32 0.2548296, %v642_v9  ;;  %1650 = vmatprep.subr.bf16.mxu0 %v1649_v53  ;;  %1062 = vperm.xlu0 %1755, %v2265_v35   ;;  %v802_v6 = vpop.permute.xlu0 %801 }
 0x18e   : > { %v639_v16 = vadd.f32 -0.28449672, %v635_v10  ;;  %v818_v61 = vpop.permute.xlu1 %817 }
 0x18f   : > { %v673_v17 = vsub.f32 1.0, %v669_v13  ;;  %v680_v19 = vadd.f32 1.0, %v676_v14  ;;  %v650_v18 = vmul.f32 %v1765_v28, %v646_v15 }
 0x190   : > { %v643_v21 = vmul.f32 %v1767_v39, %v639_v16  ;;  %1652 = vmatpush3.bf16.msra.mxu0 %v1649_v53  ;;  %1066 = vperm.xlu1 %1754, %v2284_v42  }
 0x191   : > { %v677_v23 = vmul.f32 %v673_v17, %v593_v20  ;;  %v684_v24 = vmul.f32 %v680_v19, %v580_v48  ;;  %v670_v25 = vmul.f32 %v1773_v22, %v650_v18  ;;  %1654 = vmatprep.subr.bf16.mxu0 %v1653_v57  ;;  %1757 = vset.pattern.permute.xlu0 %v1973_v59  ;;  %v806_v13 = vpop.permute.xlu0 %805 }
 0x192   : > { %v647_v26 = vadd.f32 0.2548296, %v643_v21  ;;  %1082 = vperm.xlu0 %1757, %v2265_v35   ;;  %v822_v1 = vpop.permute.xlu1 %821 }
 0x193   : > { %v681_v27 = vadd.f32 1.0, %v677_v23  ;;  %1538 = vmatprep.mubr.f32.mxu1 %v684_v24  ;;  %v674_v29 = vsub.f32 1.0, %v670_v25 }
 0x194   : > { %v651_v30 = vmul.f32 %v1767_v39, %v647_v26  ;;  %1656 = vmatpush3.bf16.msra.mxu0 %v1653_v57  ;;  %1756 = vset.pattern.permute.xlu1 %v1973_v59 }
 0x195   : > { %v685_v33 = vmul.f32 %v681_v27, %v581_v56  ;;  %v678_v28 = vmul.f32 %v674_v29, %v594_v31  ;;  %1078 = vperm.xlu1 %1756, %v2252_v32   ;;  %v826_v23 = vpop.permute.xlu0 %825 }
 0x196   : > { %v671_v34 = vmul.f32 %v1775_v41, %v651_v30  ;;  %1090 = vperm.xlu0 %1757, %v2289_v44   ;;  %v810_v10 = vpop.permute.xlu1 %809 }
 0x197   : > { %1539 = vmatmul.mubr.f32.vlgmr.msra.gmra.mrb[0].mxu1 %v685_v33  ;;  %v682_v36 = vadd.f32 1.0, %v678_v28 }
 0x198   : > { %v675_v37 = vsub.f32 1.0, %v671_v34 }
 0x199   : > { %v686_v50 = vmul.f32 %v682_v36, %v582_v3  ;;  %1758 = vset.pattern.permute.xlu1 %v1972_v58 }
 0x19a   : > { %v679_v40 = vmul.f32 %v675_v37, %v595_v38  ;;  %1070 = vperm.xlu1 %1758, %v2289_v44   ;;  %v830_v18 = vpop.permute.xlu1 %829 }
 0x19b   : > { %1541 = vmatprep.mubr.f32.mxu1 %v686_v50 }
 0x19c   : > { %v683_v39 = vadd.f32 1.0, %v679_v40 }
 0x19e   : > { %v687_v45 = vmul.f32 %v683_v39, %v583_v43  ;;  %1759 = vset.pattern.permute.xlu1 %v1973_v59 }
 0x19f   : > { %1086 = vperm.xlu1 %1759, %v2284_v42  }
 0x1a0   : > { %1542 = vmatmul.mubr.f32.gmra.mrb[2].mxu1 %v687_v45 }
 0x26a   : > { %v1540_v0 = vpop.f32.mrb[0].mxu1 }
 0x26b   : > { %v783_v2 = vadd.f32 %v1540_v0, %v1414_v63  ;;  %v777_v4 = vpop.f32.mrb[1].mxu1 }
 0x26c   : > { %v778_v35 = vadd.f32 %v1414_v63, %v777_v4 }
 0x26d   : > { %v813_v7 = vmul.f32 %v802_v6, %v783_v2 }
 0x26e   : > { %v812_v9 = vmul.f32 %v798_v60, %v778_v35 }
 0x26f   : > { %v2450_v32 = vadd.f32 %v822_v1, %v813_v7 }
 0x270   : > { %v2452_v12 = vadd.f32 %v818_v61, %v812_v9 }
 0x271   : > { %v2455_v44 = vmul.f32 0.70710677, %v2450_v32 }
 0x272   : > { %v2458_v42 = vmul.f32 0.70710677, %v2452_v12 }
 0x273   : > { %v853_v14 = vand.u32 2147483647, %v2455_v44  ;;  %v1543_v15 = vpop.f32.mrb[2].mxu1  ;;  %vm845_vm4 = vcmp.ge.f32.partialorder %v2455_v44, 0.0 }
 0x274   : > { %v852_v16 = vand.u32 2147483647, %v2458_v42  ;;  %v793_v48 = vadd.f32 %v1543_v15, %v1414_v63  ;;  %v787_v17 = vpop.f32.mrb[3].mxu1  ;;  %vm844_vm5 = vcmp.ge.f32.partialorder %v2458_v42, 0.0 }
 0x275   : > { %v857_v19 = vmul.f32 0.3275911, %v853_v14  ;;  %v788_v20 = vadd.f32 %v1414_v63, %v787_v17  ;;  %v909_v28 = vsub.f32 0.0, %v853_v14 }
 0x276   : > { %v856_v21 = vmul.f32 0.3275911, %v852_v16  ;;  %v815_v22 = vmul.f32 %v810_v10, %v793_v48  ;;  %v908_v3 = vsub.f32 0.0, %v852_v16 }
 0x277   : > { %v861_v24 = vadd.f32 1.0, %v857_v19  ;;  %v814_v25 = vmul.f32 %v806_v13, %v788_v20  ;;  %v913_v50 = vmul.f32 %v909_v28, %v853_v14 }
 0x278   : > { %v860_v26 = vadd.f32 1.0, %v856_v21  ;;  %v2462_v56 = vadd.f32 %v830_v18, %v815_v22  ;;  %v912_v39 = vmul.f32 %v908_v3, %v852_v16 }
 0x279   : > { %1776 = vrcp.f32 %v861_v24  ;;  %v2464_v27 = vadd.f32 %v826_v23, %v814_v25  ;;  %v918_v62 = vmul.f32 1.442695, %v913_v50 }
 0x27a   : > { %1778 = vrcp.f32 %v860_v26  ;;  %v2467_v29 = vmul.f32 0.70710677, %v2462_v56  ;;  %v916_v5 = vmul.f32 1.442695, %v912_v39 }
 0x27b   : > { %v2470_v30 = vmul.f32 0.70710677, %v2464_v27 }
 0x27c   : > { %v855_v41 = vand.u32 2147483647, %v2467_v29  ;;  %vm847_vm7 = vcmp.ge.f32.partialorder %v2467_v29, 0.0  ;;  %v838_v29 = vmul.f32 0.5, %v2464_v27  ;;  %v1224_v27 = vld [vmem:[%s2598_s8 + $0x18] sm:$0xff] }
 0x27d   : > { %v854_v31 = vand.u32 2147483647, %v2470_v30  ;;  %vm846_vm8 = vcmp.ge.f32.partialorder %v2470_v30, 0.0 }
 0x27e   : > { %v859_v33 = vmul.f32 0.3275911, %v855_v41  ;;  %v911_v49 = vsub.f32 0.0, %v855_v41 }
 0x27f   : > { %v858_v34 = vmul.f32 0.3275911, %v854_v31  ;;  %v910_v51 = vsub.f32 0.0, %v854_v31 }
 0x280   : > { %v863_v36 = vadd.f32 1.0, %v859_v33  ;;  %v915_v58 = vmul.f32 %v911_v49, %v855_v41  ;;  %v849_v33 = vsel %vm845_vm4, 1.0, %v1971_v11 }
 0x281   : > { %v862_v37 = vadd.f32 1.0, %v858_v34  ;;  %v914_v61 = vmul.f32 %v910_v51, %v854_v31 }
 0x282   : > { %1780 = vrcp.f32 %v863_v36  ;;  %v922_v35 = vmul.f32 1.442695, %v915_v58  ;;  %v848_v36 = vsel %vm844_vm5, 1.0, %v1971_v11 }
 0x283   : > { %v1777_v38 = vpop.eup %1776  ;;  %1782 = vrcp.f32 %v862_v37  ;;  %v920_v10 = vmul.f32 1.442695, %v914_v61  ;;  %v1221_v61 = vld [vmem:[%s2598_s8] sm:$0xff] }
 0x284   : > { %v1779_v40 = vpop.eup %1778  ;;  %v873_v43 = vmul.f32 1.0614054, %v1777_v38  ;;  %1784 = vpow2.f32 %v918_v62 }
 0x285   : > { %v872_v45 = vmul.f32 1.0614054, %v1779_v40  ;;  %1786 = vpow2.f32 %v916_v5 }
 0x286   : > { %v877_v8 = vadd.f32 -1.4531521, %v873_v43  ;;  %1788 = vpow2.f32 %v922_v35  ;;  %v836_v43 = vmul.f32 0.5, %v2452_v12  ;;  %v851_v12 = vsel %vm847_vm7, 1.0, %v1971_v11 }
 0x287   : > { %v876_v46 = vadd.f32 -1.4531521, %v872_v45  ;;  %1790 = vpow2.f32 %v920_v10 }
 0x288   : > { %v881_v47 = vmul.f32 %v1777_v38, %v877_v8  ;;  %v837_v8 = vmul.f32 0.5, %v2450_v32 }
 0x289   : > { %v880_v52 = vmul.f32 %v1779_v40, %v876_v46 }
 0x28a   : > { %v885_v53 = vadd.f32 1.4214138, %v881_v47 }
 0x28b   : > { %v884_v54 = vadd.f32 1.4214138, %v880_v52 }
 0x28c   : > { %v1781_v55 = vpop.eup %1780  ;;  %v889_v57 = vmul.f32 %v1777_v38, %v885_v53 }
 0x28d   : > { %v1783_v59 = vpop.eup %1782  ;;  %v875_v60 = vmul.f32 1.0614054, %v1781_v55  ;;  %v888_v63 = vmul.f32 %v1779_v40, %v884_v54  ;;  %v850_v54 = vsel %vm846_vm8, 1.0, %v1971_v11 }
 0x28e   : > { %v893_v0 = vadd.f32 -0.28449672, %v889_v57  ;;  %v874_v1 = vmul.f32 1.0614054, %v1783_v59  ;;  %v1785_v20 = vpop.eup %1784 }
 0x28f   : > { %v879_v2 = vadd.f32 -1.4531521, %v875_v60  ;;  %v892_v4 = vadd.f32 -0.28449672, %v888_v63  ;;  %v1787_v22 = vpop.eup %1786  ;;  %v1222_v63 = vld [vmem:[%s2598_s8 + $0x8] sm:$0xff] }
 0x290   : > { %v897_v6 = vmul.f32 %v1777_v38, %v893_v0  ;;  %v878_v7 = vadd.f32 -1.4531521, %v874_v1  ;;  %v1789_v45 = vpop.eup %1788  ;;  %v1658_v0 = vpack.c.bf16 %v1222_v63, %v1221_v61  ;;  %v1974_v1 = vmov 0.0|0.0  }
 0x291   : > { %v883_v9 = vmul.f32 %v1781_v55, %v879_v2  ;;  %v896_v13 = vmul.f32 %v1779_v40, %v892_v4  ;;  %v1791_v46 = vpop.eup %1790  ;;  %1657 = vmatprep.subr.bf16.mxu1 %v1974_v1  ;;  %v1976_v4 = vmov 0.0  }
 0x292   : > { %v901_v14 = vadd.f32 0.2548296, %v897_v6  ;;  %v882_v15 = vmul.f32 %v1783_v59, %v878_v7  ;;  %1659 = vmatpush3.bf16.msra.mxu1 %v1658_v0  ;;  %1574 = vmatprep.mubr.msk.f32.mxu1 %vm1975_vm9, %v1976_v4  ;;  %v1059_v6 = vpop.permute.xlu1 %1058  ;;  %v1063_v7 = vpop.permute.xlu0 %1062 }
 0x293   : > { %v887_v16 = vadd.f32 1.4214138, %v883_v9  ;;  %v900_v48 = vadd.f32 0.2548296, %v896_v13  ;;  %1660 = vmatprep.subr.bf16.mxu1 %v1974_v1  ;;  %v1415_v9 = vld [vmem:[#allocation5] ss:$0 sm:$0xff] }
 0x294   : > { %v905_v17 = vmul.f32 %v1777_v38, %v901_v14  ;;  %v886_v19 = vadd.f32 1.4214138, %v882_v15 }
 0x295   : > { %v891_v18 = vmul.f32 %v1781_v55, %v887_v16  ;;  %v904_v21 = vmul.f32 %v1779_v40, %v900_v48 }
 0x296   : > { %v925_v23 = vmul.f32 %v1785_v20, %v905_v17  ;;  %v890_v24 = vmul.f32 %v1783_v59, %v886_v19  ;;  %v1067_v35 = vpop.permute.xlu1 %1066  ;;  %v1083_v48 = vpop.permute.xlu0 %1082 }
 0x297   : > { %v895_v25 = vadd.f32 -0.28449672, %v891_v18  ;;  %v924_v26 = vmul.f32 %v1787_v22, %v904_v21 }
 0x298   : > { %v929_v41 = vsub.f32 1.0, %v925_v23  ;;  %v894_v31 = vadd.f32 -0.28449672, %v890_v24 }
 0x299   : > { %v899_v28 = vmul.f32 %v1781_v55, %v895_v25  ;;  %v928_v34 = vsub.f32 1.0, %v924_v26 }
 0x29a   : > { %v933_v3 = vmul.f32 %v929_v41, %v849_v33  ;;  %v898_v37 = vmul.f32 %v1783_v59, %v894_v31  ;;  %v1079_v13 = vpop.permute.xlu1 %1078 }
 0x29b   : > { %v903_v38 = vadd.f32 0.2548296, %v899_v28  ;;  %v932_v50 = vmul.f32 %v928_v34, %v848_v36  ;;  %v1091_v34 = vpop.permute.xlu0 %1090 }
 0x29c   : > { %v937_v40 = vadd.f32 1.0, %v933_v3  ;;  %v902_v44 = vadd.f32 0.2548296, %v898_v37 }
 0x29d   : > { %v907_v39 = vmul.f32 %v1781_v55, %v903_v38  ;;  %v936_v42 = vadd.f32 1.0, %v932_v50 }
 0x29e   : > { %v906_v62 = vmul.f32 %v1783_v59, %v902_v44  ;;  %v941_v49 = vmul.f32 %v937_v40, %v837_v8  ;;  %v839_v59 = vmul.f32 0.5, %v2462_v56  ;;  %v1223_v56 = vld [vmem:[%s2598_s8 + $0x10] sm:$0xff]  ;;  %v1071_v21 = vpop.permute.xlu1 %1070 }
 0x29f   : > { %v927_v47 = vmul.f32 %v1789_v45, %v907_v39  ;;  %v940_v5 = vmul.f32 %v936_v42, %v836_v43  ;;  %v1661_v2 = vpack.c.bf16 %v1224_v27, %v1223_v56 }
 0x2a0   : > { %v926_v51 = vmul.f32 %v1791_v46, %v906_v62 }
 0x2a1   : > { %v931_v52 = vsub.f32 1.0, %v927_v47  ;;  %1560 = vmatprep.mubr.msk.f32.mxu0 %vm959_vm6, %v940_v5  ;;  %1662 = vmatpush3.bf16.msra.mxu1 %v1661_v2 }
 0x2a2   : > { %v930_v53 = vsub.f32 1.0, %v926_v51  ;;  %1561 = vmatmul.mubr.msk.f32.vlgmr.msra.gmra.mrb[8].mxu0 %vm959_vm6, %v941_v49  ;;  %v1087_v37 = vpop.permute.xlu1 %1086 }
 0x2a3   : > { %v935_v32 = vmul.f32 %v931_v52, %v851_v12 }
 0x2a4   : > { %v934_v55 = vmul.f32 %v930_v53, %v850_v54 }
 0x2a5   : > { %v939_v57 = vadd.f32 1.0, %v935_v32 }
 0x2a6   : > { %v938_v58 = vadd.f32 1.0, %v934_v55 }
 0x2a7   : > { %v943_v60 = vmul.f32 %v939_v57, %v839_v59 }
 0x2a8   : > { %v942_v30 = vmul.f32 %v938_v58, %v838_v29 }
 0x2aa   : > { %1563 = vmatprep.mubr.msk.f32.mxu0 %vm959_vm6, %v942_v30 }
 0x2ab   : > { %1564 = vmatmul.mubr.msk.f32.gmra.mrb[10].mxu0 %vm959_vm6, %v943_v60 }
 0x375   : > { %v1562_v10 = vpop.f32.mrb[8].mxu0 }
 0x376   : > { %v1044_v14 = vadd.f32 %v1562_v10, %v1415_v9  ;;  %v1038_v15 = vpop.f32.mrb[9].mxu0 }
 0x377   : > { %v1039_v16 = vadd.f32 %v1415_v9, %v1038_v15 }
 0x378   : > { %v1074_v17 = vmul.f32 %v1063_v7, %v1044_v14 }
 0x379   : > { %v1073_v19 = vmul.f32 %v1059_v6, %v1039_v16 }
 0x37a   : > { %v2502_v20 = vadd.f32 %v1083_v48, %v1074_v17 }
 0x37b   : > { %v2504_v18 = vadd.f32 %v1079_v13, %v1073_v19 }
 0x37c   : > { %v2507_v22 = vmul.f32 0.70710677, %v2502_v20 }
 0x37d   : > { %v2510_v23 = vmul.f32 0.70710677, %v2504_v18 }
 0x37e   : > { %v1114_v24 = vand.u32 2147483647, %v2507_v22  ;;  %v1565_v25 = vpop.f32.mrb[10].mxu0  ;;  %vm1106_vm10 = vcmp.ge.f32.partialorder %v2507_v22, 0.0  ;;  %v1098_v22 = vmul.f32 0.5, %v2502_v20 }
 0x37f   : > { %v1113_v26 = vand.u32 2147483647, %v2510_v23  ;;  %v1054_v41 = vadd.f32 %v1565_v25, %v1415_v9  ;;  %v1048_v31 = vpop.f32.mrb[11].mxu0  ;;  %vm1105_vm11 = vcmp.ge.f32.partialorder %v2510_v23, 0.0  ;;  %v1097_v23 = vmul.f32 0.5, %v2504_v18 }
 0x380   : > { %v1118_v33 = vmul.f32 0.3275911, %v1114_v24  ;;  %v1049_v28 = vadd.f32 %v1415_v9, %v1048_v31  ;;  %v1170_v46 = vsub.f32 0.0, %v1114_v24 }
 0x381   : > { %v1117_v3 = vmul.f32 0.3275911, %v1113_v26  ;;  %v1076_v36 = vmul.f32 %v1071_v21, %v1054_v41  ;;  %v1169_v5 = vsub.f32 0.0, %v1113_v26 }
 0x382   : > { %v1122_v38 = vadd.f32 1.0, %v1118_v33  ;;  %v1075_v50 = vmul.f32 %v1067_v35, %v1049_v28  ;;  %v1174_v12 = vmul.f32 %v1170_v46, %v1114_v24  ;;  %v1110_v46 = vsel %vm1106_vm10, 1.0, %v1971_v11 }
 0x383   : > { %v1121_v40 = vadd.f32 1.0, %v1117_v3  ;;  %v2514_v44 = vadd.f32 %v1091_v34, %v1076_v36  ;;  %v1173_v32 = vmul.f32 %v1169_v5, %v1113_v26  ;;  %v1109_v5 = vsel %vm1105_vm11, 1.0, %v1971_v11 }
 0x384   : > { %1792 = vrcp.f32 %v1122_v38  ;;  %v2516_v43 = vadd.f32 %v1087_v37, %v1075_v50  ;;  %v1179_v58 = vmul.f32 1.442695, %v1174_v12 }
 0x385   : > { %1794 = vrcp.f32 %v1121_v40  ;;  %v2519_v39 = vmul.f32 0.70710677, %v2514_v44  ;;  %v1177_v59 = vmul.f32 1.442695, %v1173_v32 }
 0x386   : > { %v2522_v42 = vmul.f32 0.70710677, %v2516_v43 }
 0x387   : > { %v1116_v45 = vand.u32 2147483647, %v2519_v39  ;;  %vm1108_vm13 = vcmp.ge.f32.partialorder %v2519_v39, 0.0  ;;  %v1100_v39 = vmul.f32 0.5, %v2514_v44 }
 0x388   : > { %v1115_v8 = vand.u32 2147483647, %v2522_v42  ;;  %vm1107_vm14 = vcmp.ge.f32.partialorder %v2522_v42, 0.0  ;;  %v1112_v18 = vsel %vm1108_vm13, 1.0, %v1971_v11 }
 0x389   : > { %v1120_v62 = vmul.f32 0.3275911, %v1116_v45  ;;  %v1172_v60 = vsub.f32 0.0, %v1116_v45 }
 0x38a   : > { %v1119_v47 = vmul.f32 0.3275911, %v1115_v8  ;;  %v1171_v63 = vsub.f32 0.0, %v1115_v8 }
 0x38b   : > { %v1124_v49 = vadd.f32 1.0, %v1120_v62  ;;  %v1176_v2 = vmul.f32 %v1172_v60, %v1116_v45 }
 0x38c   : > { %v1123_v51 = vadd.f32 1.0, %v1119_v47  ;;  %v1175_v7 = vmul.f32 %v1171_v63, %v1115_v8 }
 0x38d   : > { %1796 = vrcp.f32 %v1124_v49  ;;  %v1183_v16 = vmul.f32 1.442695, %v1176_v2  ;;  %v1111_v2 = vsel %vm1107_vm14, 1.0, %v1971_v11 }
 0x38e   : > { %v1793_v52 = vpop.eup %1792  ;;  %1798 = vrcp.f32 %v1123_v51  ;;  %v1181_v21 = vmul.f32 1.442695, %v1175_v7 }
 0x38f   : > { %v1795_v53 = vpop.eup %1794  ;;  %v1134_v54 = vmul.f32 1.0614054, %v1793_v52  ;;  %1800 = vpow2.f32 %v1179_v58 }
 0x390   : > { %v1133_v55 = vmul.f32 1.0614054, %v1795_v53  ;;  %1802 = vpow2.f32 %v1177_v59 }
 0x391   : > { %v1138_v57 = vadd.f32 -1.4531521, %v1134_v54  ;;  %1804 = vpow2.f32 %v1183_v16 }
 0x392   : > { %v1137_v29 = vadd.f32 -1.4531521, %v1133_v55  ;;  %1806 = vpow2.f32 %v1181_v21 }
 0x393   : > { %v1142_v30 = vmul.f32 %v1793_v52, %v1138_v57 }
 0x394   : > { %v1141_v61 = vmul.f32 %v1795_v53, %v1137_v29 }
 0x395   : > { %v1146_v0 = vadd.f32 1.4214138, %v1142_v30 }
 0x396   : > { %v1145_v1 = vadd.f32 1.4214138, %v1141_v61 }
 0x397   : > { %v1797_v56 = vpop.eup %1796  ;;  %v1150_v27 = vmul.f32 %v1793_v52, %v1146_v0 }
 0x398   : > { %v1799_v4 = vpop.eup %1798  ;;  %v1149_v6 = vmul.f32 %v1795_v53, %v1145_v1  ;;  %v1136_v35 = vmul.f32 1.0614054, %v1797_v56 }
 0x399   : > { %v1154_v9 = vadd.f32 -0.28449672, %v1150_v27  ;;  %v1135_v10 = vmul.f32 1.0614054, %v1799_v4  ;;  %v1801_v28 = vpop.eup %1800 }
 0x39a   : > { %v1153_v13 = vadd.f32 -0.28449672, %v1149_v6  ;;  %v1140_v14 = vadd.f32 -1.4531521, %v1136_v35  ;;  %v1803_v36 = vpop.eup %1802  ;;  %v1099_v35 = vmul.f32 0.5, %v2516_v43 }
 0x39b   : > { %v1158_v15 = vmul.f32 %v1793_v52, %v1154_v9  ;;  %v1139_v48 = vadd.f32 -1.4531521, %v1135_v10  ;;  %v1805_v57 = vpop.eup %1804  ;;  %v1225_v43 = vld [vmem:[#allocation7] sm:$0x1] }
 0x39c   : > { %v1157_v17 = vmul.f32 %v1795_v53, %v1153_v13  ;;  %v1144_v19 = vmul.f32 %v1797_v56, %v1140_v14  ;;  %v1807_v59 = vpop.eup %1806 }
 0x39d   : > { %v1162_v24 = vadd.f32 0.2548296, %v1158_v15  ;;  %v1143_v25 = vmul.f32 %v1799_v4, %v1139_v48 }
 0x39e   : > { %v1161_v26 = vadd.f32 0.2548296, %v1157_v17  ;;  %v1148_v41 = vadd.f32 1.4214138, %v1144_v19 }
 0x39f   : > { %v1166_v31 = vmul.f32 %v1793_v52, %v1162_v24  ;;  %v1147_v33 = vadd.f32 1.4214138, %v1143_v25 }
 0x3a0   : > { %v1165_v34 = vmul.f32 %v1795_v53, %v1161_v26  ;;  %v1152_v3 = vmul.f32 %v1797_v56, %v1148_v41 }
 0x3a1   : > { %v1186_v37 = vmul.f32 %v1801_v28, %v1166_v31  ;;  %v1151_v38 = vmul.f32 %v1799_v4, %v1147_v33 }
 0x3a2   : > { %v1185_v50 = vmul.f32 %v1803_v36, %v1165_v34  ;;  %v1156_v40 = vadd.f32 -0.28449672, %v1152_v3 }
 0x3a3   : > { %v1190_v45 = vsub.f32 1.0, %v1186_v37  ;;  %v1155_v8 = vadd.f32 -0.28449672, %v1151_v38 }
 0x3a4   : > { %v1189_v62 = vsub.f32 1.0, %v1185_v50  ;;  %v1160_v47 = vmul.f32 %v1797_v56, %v1156_v40 }
 0x3a5   : > { %v1194_v49 = vmul.f32 %v1190_v45, %v1110_v46  ;;  %v1159_v51 = vmul.f32 %v1799_v4, %v1155_v8 }
 0x3a6   : > { %v1193_v52 = vmul.f32 %v1189_v62, %v1109_v5  ;;  %v1164_v12 = vadd.f32 0.2548296, %v1160_v47 }
 0x3a7   : > { %v1198_v53 = vadd.f32 1.0, %v1194_v49  ;;  %v1163_v32 = vadd.f32 0.2548296, %v1159_v51 }
 0x3a8   : > { %v1197_v54 = vadd.f32 1.0, %v1193_v52  ;;  %v1168_v55 = vmul.f32 %v1797_v56, %v1164_v12 }
 0x3a9   : > { %v1202_v29 = vmul.f32 %v1198_v53, %v1098_v22  ;;  %v1167_v58 = vmul.f32 %v1799_v4, %v1163_v32 }
 0x3aa   : > { %v1201_v30 = vmul.f32 %v1197_v54, %v1097_v23  ;;  %v1188_v60 = vmul.f32 %v1805_v57, %v1168_v55 }
 0x3ab   : > { %v1207_v61 = vsel %vm1205_vm12, %v1202_v29, 0.0  ;;  %v1187_v20 = vmul.f32 %v1807_v59, %v1167_v58 }
 0x3ac   : > { %v1206_v63 = vsel %vm1205_vm12, %v1201_v30, 0.0  ;;  %v1192_v0 = vsub.f32 1.0, %v1188_v60 }
 0x3ad   : > { %v1208_v1 = vadd.f32 %v1207_v61, %v1206_v63  ;;  %v1191_v56 = vsub.f32 1.0, %v1187_v20 }
 0x3ae   : > { %v1196_v27 = vmul.f32 %v1192_v0, %v1112_v18 }
 0x3af   : > { %v1195_v4 = vmul.f32 %v1191_v56, %v1111_v2 }
 0x3b0   : > { %v1200_v6 = vadd.f32 1.0, %v1196_v27 }
 0x3b1   : > { %v1199_v7 = vadd.f32 1.0, %v1195_v4 }
 0x3b2   : > { %v1204_v42 = vmul.f32 %v1200_v6, %v1100_v39 }
 0x3b3   : > { %v1203_v9 = vmul.f32 %v1199_v7, %v1099_v35 }
 0x3b4   : > { %v1211_v14 = vsel %vm1205_vm12, %v1204_v42, 0.0 }
 0x3b5   : > { %v1209_v10 = vsel %vm1205_vm12, %v1203_v9, 0.0 }
 0x3b6   : > { %v1210_v13 = vadd.f32 %v1209_v10, %v1208_v1 }
 0x3b8   : > { %v1212_v15 = vadd.f32 %v1211_v14, %v1210_v13 }
 0x3ba   : > { %v1213_v16 = vrot.slane %v1212_v15, 4 }
 0x3bc   : > { %v1214_v48 = vadd.f32 %v1213_v16, %v1212_v15 }
 0x3be   : > { %v1215_v11 = vrot.slane %v1214_v48, 2 }
 0x3c0   : > { %v1216_v17 = vadd.f32 %v1215_v11, %v1214_v48 }
 0x3c2   : > { %v1217_v19 = vrot.slane %v1216_v17, 1 }
 0x3c4   : > { %v1218_v21 = vadd.f32 %v1217_v19, %v1216_v17 }
 0x3c6   : > { %v1220_v44 = vmul.f32 0.03125, %v1218_v21 }
 0x3c8   : > { %1575 = vmatmul.mubr.msk.f32.vlgmr.msra.gmra.mrb[4].mxu1 %vm1205_vm12, %v1220_v44 }
 0x49b   : > { %v1295_v24 = vpop.f32.mrb[4].mxu1 }
 0x49c   : > { %v1296_v25 = vadd.f32 %v1295_v24, %v1225_v43  ;;  %v1576_v26 = vpop.f32.mrb[5].mxu1 }
 0x49e   : > { %1300 = vst.msk [vmem:[%s392_s21] sm:$0x1] %vm1299_vm15, %v1296_v25 }
 0x49f   : > { %1905 = shalt.err (!%p1902_p11)
}
 0x4a0   : > { %s1906_s20 = scalar_lea.hbm %s2548_s29, 16  ;;  %s1910_s30 = scalar_lea.hbm %s2600_s10, 64 }
 0x4a1   : > { %p1907_p13 = scmp.ne.s32.totalorder %s2548_s29, %s1906_s20  ;;  %p1911_p6 = scmp.lt.u32.totalorder %s2548_s29, %s2600_s10 }
 0x4a2   : > { %p1912_p5 = scmp.lt.u32.totalorder %s1910_s30, %s1906_s20  ;;  %p1914_p9 = scmp.lt.u32.totalorder %s1906_s20, %s2548_s29 }
 0x4a3   : > { %p1908_p0 = pnand %p1907_p13, %p2622_p10 }
 0x4a4   : > { %p1913_p12 = por %p1912_p5, %p1911_p6 }
 0x4a5   : > { %p1909_p1 = pneg %p1908_p0 }
 0x4a6   : > { %p1915_p2 = por %p1914_p9, %p1913_p12 }
 0x4a8   : > { %p1916_p3 = pnand %p1915_p2, %p1909_p1 }
 0x4aa   : > { %1919 = shalt.err (!%p1916_p3)
}
 0x4ab   : > { %1675 = dma.vmem_to_hbm [thread:$0]  (%p2622_p10), %s2550_s18, 16, %s2548_s29, %s1302_s11  }
 0x4ac PF: > { %s2623_s21 = sld [smem:[#allocation15_spill]]  ;;  %p1697_p4 = scmp.ge.s32.totalorder %s1962_s16, 2 }
 0x4ad   : > { %s1326_s22 = sand.u32 1, %s1950_s13  }
 0x4ae   : > { %s1327_s27 = scalar_lea.sflag [#allocation4], %s1326_s22 }
 0x4b2   : > { %p2624_p7 = scmp.ne.s32.totalorder %s2623_s21, 0 }
 0x4b4   : > { %p1688_p8 = pnand %p1697_p4, %p2624_p7 }
 0x4b6   : > { %1945 = dma.done.wait (!%p1688_p8), %s1327_s27, 16  }
 0x4b7   : > { %1947 = vsyncadd (!%p1688_p8), %s1327_s27, 4294967280  ;;  %s2625_s16 = sld [smem:[#allocation13_spill]]  ;;  %s2626_s19 = sld [smem:[#allocation12_spill]] }
 0x4b8   : > { %s2627_s15 = sld [smem:[#allocation14_spill]]  ;;  %s2628_s13 = smov %s1954_s14 }
 0x4bd   : > { %p22_p11 = scmp.ge.s32.totalorder %s2625_s16, 6   ;;  %s2629_s14 = smov %s2626_s19 }
 0x4bf   :  { %24 = sbr.rel (!%p22_p11) target bundleno = 5 (0x5), region = 108 }
 0x4c6   :  { %1331 = vsyncpa [#allocation3], 1 }
 0x4c7   :  { %1333 = vsyncpa [#allocation3 + $0x1], 1 }
 0x4c8   :  { %1334 = vsyncpa [#allocation6], 1 }
 0x4c9   :  { %1335 = vsyncpa [#allocation4], 1 }
 0x4ca   :  { %1337 = vsyncpa [#allocation4 + $0x1], 1 }

</bundles_post_ra>
